<compile_context>
chip_gen: v6e
topology: v6e:2x2x1
jax: 0.10.0
libtpu: 0.0.40
codegen_flags: <defaults>
</compile_context>

<pallas_src>
import functools

import jax
import jax.numpy as jnp
from jax import lax
from jax.experimental import pallas as pl
from jax.experimental.pallas import tpu as pltpu


# ----------------------------- Pallas kernel -------------------------------- #
def _downsample_band_kernel(xm_ref, xh_ref, w01_ref, w2_ref, b_ref, o_ref,
                            *, tho, wo, cin, cout):
    """One grid step: (batch b, output-row band i).

    xm_ref : (1, 2*tho, Wo+1, 2*C)  column-folded input rows [2*i*tho, 2*i*tho+2*tho)
    xh_ref : (1, 1,     Wo+1, 2*C)  one-row bottom halo (input row 2*(i+1)*tho)
    w01_ref: (3, 2*C, Cout)         taps (kh, kw=0) and (kh, kw=1) stacked along Cin
    w2_ref : (3,   C, Cout)         taps (kh, kw=2)
    b_ref  : (1, Cout) f32 bias
    o_ref  : (1, tho, Wo, Cout)     output rows [i*tho, (i+1)*tho)
    """
    bias = b_ref[...].astype(jnp.float32)                     # (1, Cout)
    for r in range(tho):                                       # static unroll
        acc = jnp.zeros((wo, cout), jnp.float32)
        for kh in range(3):
            h = 2 * r + kh                                     # band-local input row
            if h < 2 * tho:
                x01 = xm_ref[0, h, 0:wo, :]                    # (Wo, 2C)  taps kw=0,1
                x2 = xm_ref[0, h, 1:wo + 1, 0:cin]             # (Wo,  C)  tap  kw=2
            else:                                              # only r==tho-1, kh==2
                x01 = xh_ref[0, 0, 0:wo, :]
                x2 = xh_ref[0, 0, 1:wo + 1, 0:cin]
            acc = acc + jnp.dot(x01, w01_ref[kh],
                                preferred_element_type=jnp.float32)
            acc = acc + jnp.dot(x2, w2_ref[kh],
                                preferred_element_type=jnp.float32)
        o_ref[0, r] = (acc + bias).astype(o_ref.dtype)


# ------------------------------ band sizing --------------------------------- #
def _pick_band_rows(Ho, Wo, C, itemsize, batch):
    target_m = 512                                   # ~512 output "M rows" per grid step
    tho = max(1, min(Ho, target_m // max(Wo, 1)))
    # keep the input band under ~4 MiB of VMEM (it gets double-buffered)
    row_bytes = 2 * (Wo + 1) * 2 * C * itemsize      # 2 input rows per output row
    tho = max(1, min(tho, (4 << 20) // max(row_bytes, 1)))
    tho = min(tho, Ho)
    while Ho % tho:
        tho -= 1
    if batch * (Ho // tho) < 2 and Ho >= 2:          # keep >=2 grid steps (v7x megacore)
        tho = max(1, Ho // 2)
        while Ho % tho:
            tho -= 1
    return tho


# ----------------------------- NHWC core path -------------------------------- #
def downsample_nhwc(x_nhwc, weight, bias, *, compute_dtype=jnp.bfloat16,
                    band_rows=None):
    B, H, W, C = x_nhwc.shape
    Cout, Cin, KH, KW = weight.shape
    assert Cin == C and KH == 3 and KW == 3
    Ho, Wo = H // 2, W // 2
    # Pad so both spatial dims become even (H,W -> 2*Ho+2, 2*Wo+2).  The extra
    # row/col beyond PyTorch's (0,1,0,1) zero pad is never read by the conv.
    Hp, Wp = 2 * Ho + 2, 2 * Wo + 2
    cdt = jnp.dtype(compute_dtype)

    # One fused XLA copy: zero-pad, fold even/odd columns into channels
    # ((B,Hp,Wp,C) -> (B,Hp,Wo+1,2C) is a free row-major reshape), cast to the
    # MXU compute dtype.  No im2col patch tensor is materialized in HBM.
    xp = jnp.pad(x_nhwc, ((0, 0), (0, Hp - H), (0, Wp - W), (0, 0)))
    xf = xp.reshape(B, Hp, Wo + 1, 2 * C).astype(cdt)

    # Weights: (Cout,Cin,3,3) -> (kh,kw,Cin,Cout); stack kw=0/kw=1 along Cin to
    # match the column-folded input (exact K, no zero rows).
    wt = jnp.transpose(weight, (2, 3, 1, 0)).astype(cdt)       # (3,3,C,Cout)
    w01 = jnp.concatenate([wt[:, 0], wt[:, 1]], axis=1)        # (3, 2C, Cout)
    w2 = wt[:, 2]                                              # (3,  C, Cout)
    b2 = bias.reshape(1, Cout).astype(jnp.float32)

    if band_rows is None:
        band_rows = _pick_band_rows(Ho, Wo, C, cdt.itemsize, B)
    tho = band_rows
    assert Ho % tho == 0
    Wq = Wo + 1

    # Conservative VMEM estimate (everything double-buffered); raise the scoped
    # limit only when the defaults (16 MiB v5e / 32 MiB v6e,v7x) could be tight.
    vmem_need = 2 * ((2 * tho + 1) * Wq * 2 * C * cdt.itemsize
                     + tho * Wo * Cout * jnp.dtype(x_nhwc.dtype).itemsize
                     + 9 * C * Cout * cdt.itemsize + Cout * 4)
    compiler_kwargs = dict(dimension_semantics=("parallel", "parallel"))
    if vmem_need > 12 * 1024 * 1024:
        compiler_kwargs["vmem_limit_bytes"] = int(
            min(2 * vmem_need, 100 * 1024 * 1024))

    kernel = functools.partial(_downsample_band_kernel,
                               tho=tho, wo=Wo, cin=C, cout=Cout)

    # Note: for the real encoder Cout >= 128, so the (.., Wo, Cout) output block is
    # lane-dense; the tiny demo (Cout=4) inevitably uses masked stores.
    out = pl.pallas_call(
        kernel,
        out_shape=jax.ShapeDtypeStruct((B, Ho, Wo, Cout), x_nhwc.dtype),
        grid_spec=pltpu.PrefetchScalarGridSpec(
            num_scalar_prefetch=0,
            grid=(B, Ho // tho),
            in_specs=[
                # main band: input rows [2*i*tho, 2*i*tho + 2*tho)
                pl.BlockSpec((1, 2 * tho, Wq, 2 * C),
                             lambda b, i: (b, i, 0, 0)),
                # one-row bottom halo: input row 2*(i+1)*tho
                # (block size 1 along H => block index == element row index)
                pl.BlockSpec((1, 1, Wq, 2 * C),
                             lambda b, i: (b, 2 * tho * (i + 1), 0, 0)),
                # weights / bias: constant index maps -> resident in VMEM
                pl.BlockSpec((3, 2 * C, Cout), lambda b, i: (0, 0, 0)),
                pl.BlockSpec((3, C, Cout), lambda b, i: (0, 0, 0)),
                pl.BlockSpec((1, Cout), lambda b, i: (0, 0)),
            ],
            out_specs=pl.BlockSpec((1, tho, Wo, Cout),
                                   lambda b, i: (b, i, 0, 0)),
        ),
        compiler_params=pltpu.CompilerParams(**compiler_kwargs),
    )(xf, xf, w01, w2, b2)
    return out


# --------------------------- PyTorch-layout wrapper --------------------------- #
def downsample_forward(x_nchw, weight, bias, *, compute_dtype=jnp.bfloat16):
    """NCHW in / NCHW out, matching Downsample.forward.

    The two layout transposes below exist only to match the PyTorch API; a full
    encoder should call `downsample_nhwc` and stay NHWC end-to-end.
    """
    x_nhwc = jnp.transpose(x_nchw, (0, 2, 3, 1))
    y = downsample_nhwc(x_nhwc, weight, bias, compute_dtype=compute_dtype)
    return jnp.transpose(y, (0, 3, 1, 2))


# --------------------------------- main -------------------------------------- #
if __name__ == "__main__":
    key = jax.random.PRNGKey(0)
    k_x, k_w, k_b = jax.random.split(key, 3)

    B, C, H, W = 2, 4, 16, 16
    x = jax.random.normal(k_x, (B, C, H, W), dtype=jnp.float32)

    # Deterministic Conv2d-style init: U(-1/sqrt(fan_in), 1/sqrt(fan_in)).
    fan_in = C * 3 * 3
    bound = 1.0 / (fan_in ** 0.5)
    weight = jax.random.uniform(k_w, (C, C, 3, 3), jnp.float32, -bound, bound)
    bias = jax.random.uniform(k_b, (C,), jnp.float32, -bound, bound)

    # Reference: pad + strided conv via lax (NCHW, OIHW), f32.
    xp_ref = jnp.pad(x, ((0, 0), (0, 0), (0, 1), (0, 1)))
    ref = lax.conv_general_dilated(
        xp_ref, weight, window_strides=(2, 2), padding="VALID",
        dimension_numbers=("NCHW", "OIHW", "NCHW"),
    ) + bias.reshape(1, C, 1, 1)

    # 1) exact-path check (f32 MXU operands).
    f32_fn = jax.jit(functools.partial(downsample_forward,
                                       compute_dtype=jnp.float32))
    out32 = jax.block_until_ready(f32_fn(x, weight, bias))
    assert out32.shape == (B, C, H // 2, W // 2), out32.shape
    assert jnp.allclose(out32, ref, atol=1e-4, rtol=1e-4), float(
        jnp.max(jnp.abs(out32 - ref)))

    # 2) fast path (default: bf16 MXU operands, f32 accumulation).
    bf16_fn = jax.jit(downsample_forward)
    out = jax.block_until_ready(bf16_fn(x, weight, bias))
    assert out.shape == (B, C, H // 2, W // 2), out.shape
    assert jnp.allclose(out, ref, atol=5e-2, rtol=5e-2), float(
        jnp.max(jnp.abs(out - ref)))

    print("KERNEL_OK")
</pallas_src>

<mosaic_0001>
module attributes {stable_mosaic.version = 11 : i64} {
  func.func @_downsample_band_kernel(%arg0: i32, %arg1: i32, %arg2: memref<1x16x9x8xf32, #tpu.memory_space<vmem>>, %arg3: memref<1x1x9x8xf32, #tpu.memory_space<vmem>>, %arg4: memref<3x8x4xf32, #tpu.memory_space<vmem>>, %arg5: memref<3x4x4xf32, #tpu.memory_space<vmem>>, %arg6: memref<1x4xf32, #tpu.memory_space<vmem>>, %arg7: memref<1x8x8x4xf32, #tpu.memory_space<vmem>>) attributes {dimension_semantics = [#tpu.dimension_semantics<parallel>, #tpu.dimension_semantics<parallel>], iteration_bounds = array<i64: 2, 1>, scalar_prefetch = 0 : i64, scratch_operands = 0 : i64, tpu.core_type = #tpu.core_type<tc>, window_params = [{transform_indices = @transform_0, window_bounds = array<i64: 1, 16, 9, 8>}, {transform_indices = @transform_1, window_bounds = array<i64: 1, 1, 9, 8>}, {pipeline_mode = #tpu.pipeline_mode<synchronous>, transform_indices = @transform_2, window_bounds = array<i64: 3, 8, 4>}, {pipeline_mode = #tpu.pipeline_mode<synchronous>, transform_indices = @transform_3, window_bounds = array<i64: 3, 4, 4>}, {pipeline_mode = #tpu.pipeline_mode<synchronous>, transform_indices = @transform_4, window_bounds = array<i64: 1, 4>}, {transform_indices = @transform_5, window_bounds = array<i64: 1, 8, 8, 4>}]} {
    %c0 = arith.constant 0 : index
    %c0_0 = arith.constant 0 : index
    %0 = vector.load %arg6[%c0, %c0_0] : memref<1x4xf32, #tpu.memory_space<vmem>>, vector<1x4xf32>
    %cst = arith.constant 0.000000e+00 : f32
    %1 = vector.broadcast %cst : f32 to vector<8x4xf32>
    %c0_1 = arith.constant 0 : index
    %c0_2 = arith.constant 0 : index
    %c0_3 = arith.constant 0 : index
    %c0_4 = arith.constant 0 : index
    %2 = vector.load %arg2[%c0_1, %c0_2, %c0_3, %c0_4] : memref<1x16x9x8xf32, #tpu.memory_space<vmem>>, vector<1x1x8x8xf32>
    %3 = vector.shape_cast %2 : vector<1x1x8x8xf32> to vector<8x8xf32>
    %c0_5 = arith.constant 0 : index
    %c0_6 = arith.constant 0 : index
    %c1 = arith.constant 1 : index
    %c0_7 = arith.constant 0 : index
    %4 = vector.load %arg2[%c0_5, %c0_6, %c1, %c0_7] : memref<1x16x9x8xf32, #tpu.memory_space<vmem>>, vector<1x1x8x4xf32>
    %5 = vector.shape_cast %4 : vector<1x1x8x4xf32> to vector<8x4xf32>
    %c0_8 = arith.constant 0 : index
    %c0_9 = arith.constant 0 : index
    %c0_10 = arith.constant 0 : index
    %6 = vector.load %arg4[%c0_8, %c0_9, %c0_10] : memref<3x8x4xf32, #tpu.memory_space<vmem>>, vector<1x8x4xf32>
    %7 = vector.shape_cast %6 : vector<1x8x4xf32> to vector<8x4xf32>
    %cst_11 = arith.constant dense<0.000000e+00> : vector<8x4xf32>
    %8 = tpu.matmul %3, %7, %cst_11 {dimension_numbers = #tpu.dot_dimension_numbers<[1], [0], [0], [1], [0, 0, 1, 1], [], []>} : vector<8x8xf32>, vector<8x4xf32>, vector<8x4xf32> -> vector<8x4xf32>
    %9 = arith.addf %1, %8 : vector<8x4xf32>
    %c0_12 = arith.constant 0 : index
    %c0_13 = arith.constant 0 : index
    %c0_14 = arith.constant 0 : index
    %10 = vector.load %arg5[%c0_12, %c0_13, %c0_14] : memref<3x4x4xf32, #tpu.memory_space<vmem>>, vector<1x4x4xf32>
    %11 = vector.shape_cast %10 : vector<1x4x4xf32> to vector<4x4xf32>
    %cst_15 = arith.constant dense<0.000000e+00> : vector<8x4xf32>
    %12 = tpu.matmul %5, %11, %cst_15 {dimension_numbers = #tpu.dot_dimension_numbers<[1], [0], [0], [1], [0, 0, 1, 1], [], []>} : vector<8x4xf32>, vector<4x4xf32>, vector<8x4xf32> -> vector<8x4xf32>
    %13 = arith.addf %9, %12 : vector<8x4xf32>
    %c0_16 = arith.constant 0 : index
    %c1_17 = arith.constant 1 : index
    %c0_18 = arith.constant 0 : index
    %c0_19 = arith.constant 0 : index
    %14 = vector.load %arg2[%c0_16, %c1_17, %c0_18, %c0_19] : memref<1x16x9x8xf32, #tpu.memory_space<vmem>>, vector<1x1x8x8xf32>
    %15 = vector.shape_cast %14 : vector<1x1x8x8xf32> to vector<8x8xf32>
    %c0_20 = arith.constant 0 : index
    %c1_21 = arith.constant 1 : index
    %c1_22 = arith.constant 1 : index
    %c0_23 = arith.constant 0 : index
    %16 = vector.load %arg2[%c0_20, %c1_21, %c1_22, %c0_23] : memref<1x16x9x8xf32, #tpu.memory_space<vmem>>, vector<1x1x8x4xf32>
    %17 = vector.shape_cast %16 : vector<1x1x8x4xf32> to vector<8x4xf32>
    %c1_24 = arith.constant 1 : index
    %c0_25 = arith.constant 0 : index
    %c0_26 = arith.constant 0 : index
    %18 = vector.load %arg4[%c1_24, %c0_25, %c0_26] : memref<3x8x4xf32, #tpu.memory_space<vmem>>, vector<1x8x4xf32>
    %19 = vector.shape_cast %18 : vector<1x8x4xf32> to vector<8x4xf32>
    %cst_27 = arith.constant dense<0.000000e+00> : vector<8x4xf32>
    %20 = tpu.matmul %15, %19, %cst_27 {dimension_numbers = #tpu.dot_dimension_numbers<[1], [0], [0], [1], [0, 0, 1, 1], [], []>} : vector<8x8xf32>, vector<8x4xf32>, vector<8x4xf32> -> vector<8x4xf32>
    %21 = arith.addf %13, %20 : vector<8x4xf32>
    %c1_28 = arith.constant 1 : index
    %c0_29 = arith.constant 0 : index
    %c0_30 = arith.constant 0 : index
    %22 = vector.load %arg5[%c1_28, %c0_29, %c0_30] : memref<3x4x4xf32, #tpu.memory_space<vmem>>, vector<1x4x4xf32>
    %23 = vector.shape_cast %22 : vector<1x4x4xf32> to vector<4x4xf32>
    %cst_31 = arith.constant dense<0.000000e+00> : vector<8x4xf32>
    %24 = tpu.matmul %17, %23, %cst_31 {dimension_numbers = #tpu.dot_dimension_numbers<[1], [0], [0], [1], [0, 0, 1, 1], [], []>} : vector<8x4xf32>, vector<4x4xf32>, vector<8x4xf32> -> vector<8x4xf32>
    %25 = arith.addf %21, %24 : vector<8x4xf32>
    %c0_32 = arith.constant 0 : index
    %c2 = arith.constant 2 : index
    %c0_33 = arith.constant 0 : index
    %c0_34 = arith.constant 0 : index
    %26 = vector.load %arg2[%c0_32, %c2, %c0_33, %c0_34] : memref<1x16x9x8xf32, #tpu.memory_space<vmem>>, vector<1x1x8x8xf32>
    %27 = vector.shape_cast %26 : vector<1x1x8x8xf32> to vector<8x8xf32>
    %c0_35 = arith.constant 0 : index
    %c2_36 = arith.constant 2 : index
    %c1_37 = arith.constant 1 : index
    %c0_38 = arith.constant 0 : index
    %28 = vector.load %arg2[%c0_35, %c2_36, %c1_37, %c0_38] : memref<1x16x9x8xf32, #tpu.memory_space<vmem>>, vector<1x1x8x4xf32>
    %29 = vector.shape_cast %28 : vector<1x1x8x4xf32> to vector<8x4xf32>
    %c2_39 = arith.constant 2 : index
    %c0_40 = arith.constant 0 : index
    %c0_41 = arith.constant 0 : index
    %30 = vector.load %arg4[%c2_39, %c0_40, %c0_41] : memref<3x8x4xf32, #tpu.memory_space<vmem>>, vector<1x8x4xf32>
    %31 = vector.shape_cast %30 : vector<1x8x4xf32> to vector<8x4xf32>
    %cst_42 = arith.constant dense<0.000000e+00> : vector<8x4xf32>
    %32 = tpu.matmul %27, %31, %cst_42 {dimension_numbers = #tpu.dot_dimension_numbers<[1], [0], [0], [1], [0, 0, 1, 1], [], []>} : vector<8x8xf32>, vector<8x4xf32>, vector<8x4xf32> -> vector<8x4xf32>
    %33 = arith.addf %25, %32 : vector<8x4xf32>
    %c2_43 = arith.constant 2 : index
    %c0_44 = arith.constant 0 : index
    %c0_45 = arith.constant 0 : index
    %34 = vector.load %arg5[%c2_43, %c0_44, %c0_45] : memref<3x4x4xf32, #tpu.memory_space<vmem>>, vector<1x4x4xf32>
    %35 = vector.shape_cast %34 : vector<1x4x4xf32> to vector<4x4xf32>
    %cst_46 = arith.constant dense<0.000000e+00> : vector<8x4xf32>
    %36 = tpu.matmul %29, %35, %cst_46 {dimension_numbers = #tpu.dot_dimension_numbers<[1], [0], [0], [1], [0, 0, 1, 1], [], []>} : vector<8x4xf32>, vector<4x4xf32>, vector<8x4xf32> -> vector<8x4xf32>
    %37 = arith.addf %33, %36 : vector<8x4xf32>
    %38 = vector.broadcast %0 : vector<1x4xf32> to vector<8x4xf32>
    %39 = arith.addf %37, %38 : vector<8x4xf32>
    %c0_47 = arith.constant 0 : index
    %c0_48 = arith.constant 0 : index
    %c0_49 = arith.constant 0 : index
    %c0_50 = arith.constant 0 : index
    %40 = vector.load %arg7[%c0_47, %c0_48, %c0_49, %c0_50] : memref<1x8x8x4xf32, #tpu.memory_space<vmem>>, vector<1x1x8x4xf32>
    %41 = vector.shape_cast %40 : vector<1x1x8x4xf32> to vector<8x4xf32>
    %42 = vector.shape_cast %39 : vector<8x4xf32> to vector<1x1x8x4xf32>
    tpu.vector_store %arg7[%c0_47, %c0_48, %c0_49, %c0_50], %42 {strides = array<i32>} : memref<1x8x8x4xf32, #tpu.memory_space<vmem>>, vector<1x1x8x4xf32>,
    %cst_51 = arith.constant 0.000000e+00 : f32
    %43 = vector.broadcast %cst_51 : f32 to vector<8x4xf32>
    %c0_52 = arith.constant 0 : index
    %c2_53 = arith.constant 2 : index
    %c0_54 = arith.constant 0 : index
    %c0_55 = arith.constant 0 : index
    %44 = vector.load %arg2[%c0_52, %c2_53, %c0_54, %c0_55] : memref<1x16x9x8xf32, #tpu.memory_space<vmem>>, vector<1x1x8x8xf32>
    %45 = vector.shape_cast %44 : vector<1x1x8x8xf32> to vector<8x8xf32>
    %c0_56 = arith.constant 0 : index
    %c2_57 = arith.constant 2 : index
    %c1_58 = arith.constant 1 : index
    %c0_59 = arith.constant 0 : index
    %46 = vector.load %arg2[%c0_56, %c2_57, %c1_58, %c0_59] : memref<1x16x9x8xf32, #tpu.memory_space<vmem>>, vector<1x1x8x4xf32>
    %47 = vector.shape_cast %46 : vector<1x1x8x4xf32> to vector<8x4xf32>
    %c0_60 = arith.constant 0 : index
    %c0_61 = arith.constant 0 : index
    %c0_62 = arith.constant 0 : index
    %48 = vector.load %arg4[%c0_60, %c0_61, %c0_62] : memref<3x8x4xf32, #tpu.memory_space<vmem>>, vector<1x8x4xf32>
    %49 = vector.shape_cast %48 : vector<1x8x4xf32> to vector<8x4xf32>
    %cst_63 = arith.constant dense<0.000000e+00> : vector<8x4xf32>
    %50 = tpu.matmul %45, %49, %cst_63 {dimension_numbers = #tpu.dot_dimension_numbers<[1], [0], [0], [1], [0, 0, 1, 1], [], []>} : vector<8x8xf32>, vector<8x4xf32>, vector<8x4xf32> -> vector<8x4xf32>
    %51 = arith.addf %43, %50 : vector<8x4xf32>
    %c0_64 = arith.constant 0 : index
    %c0_65 = arith.constant 0 : index
    %c0_66 = arith.constant 0 : index
    %52 = vector.load %arg5[%c0_64, %c0_65, %c0_66] : memref<3x4x4xf32, #tpu.memory_space<vmem>>, vector<1x4x4xf32>
    %53 = vector.shape_cast %52 : vector<1x4x4xf32> to vector<4x4xf32>
    %cst_67 = arith.constant dense<0.000000e+00> : vector<8x4xf32>
    %54 = tpu.matmul %47, %53, %cst_67 {dimension_numbers = #tpu.dot_dimension_numbers<[1], [0], [0], [1], [0, 0, 1, 1], [], []>} : vector<8x4xf32>, vector<4x4xf32>, vector<8x4xf32> -> vector<8x4xf32>
    %55 = arith.addf %51, %54 : vector<8x4xf32>
    %c0_68 = arith.constant 0 : index
    %c3 = arith.constant 3 : index
    %c0_69 = arith.constant 0 : index
    %c0_70 = arith.constant 0 : index
    %56 = vector.load %arg2[%c0_68, %c3, %c0_69, %c0_70] : memref<1x16x9x8xf32, #tpu.memory_space<vmem>>, vector<1x1x8x8xf32>
    %57 = vector.shape_cast %56 : vector<1x1x8x8xf32> to vector<8x8xf32>
    %c0_71 = arith.constant 0 : index
    %c3_72 = arith.constant 3 : index
    %c1_73 = arith.constant 1 : index
    %c0_74 = arith.constant 0 : index
    %58 = vector.load %arg2[%c0_71, %c3_72, %c1_73, %c0_74] : memref<1x16x9x8xf32, #tpu.memory_space<vmem>>, vector<1x1x8x4xf32>
    %59 = vector.shape_cast %58 : vector<1x1x8x4xf32> to vector<8x4xf32>
    %c1_75 = arith.constant 1 : index
    %c0_76 = arith.constant 0 : index
    %c0_77 = arith.constant 0 : index
    %60 = vector.load %arg4[%c1_75, %c0_76, %c0_77] : memref<3x8x4xf32, #tpu.memory_space<vmem>>, vector<1x8x4xf32>
    %61 = vector.shape_cast %60 : vector<1x8x4xf32> to vector<8x4xf32>
    %cst_78 = arith.constant dense<0.000000e+00> : vector<8x4xf32>
    %62 = tpu.matmul %57, %61, %cst_78 {dimension_numbers = #tpu.dot_dimension_numbers<[1], [0], [0], [1], [0, 0, 1, 1], [], []>} : vector<8x8xf32>, vector<8x4xf32>, vector<8x4xf32> -> vector<8x4xf32>
    %63 = arith.addf %55, %62 : vector<8x4xf32>
    %c1_79 = arith.constant 1 : index
    %c0_80 = arith.constant 0 : index
    %c0_81 = arith.constant 0 : index
    %64 = vector.load %arg5[%c1_79, %c0_80, %c0_81] : memref<3x4x4xf32, #tpu.memory_space<vmem>>, vector<1x4x4xf32>
    %65 = vector.shape_cast %64 : vector<1x4x4xf32> to vector<4x4xf32>
    %cst_82 = arith.constant dense<0.000000e+00> : vector<8x4xf32>
    %66 = tpu.matmul %59, %65, %cst_82 {dimension_numbers = #tpu.dot_dimension_numbers<[1], [0], [0], [1], [0, 0, 1, 1], [], []>} : vector<8x4xf32>, vector<4x4xf32>, vector<8x4xf32> -> vector<8x4xf32>
    %67 = arith.addf %63, %66 : vector<8x4xf32>
    %c0_83 = arith.constant 0 : index
    %c4 = arith.constant 4 : index
    %c0_84 = arith.constant 0 : index
    %c0_85 = arith.constant 0 : index
    %68 = vector.load %arg2[%c0_83, %c4, %c0_84, %c0_85] : memref<1x16x9x8xf32, #tpu.memory_space<vmem>>, vector<1x1x8x8xf32>
    %69 = vector.shape_cast %68 : vector<1x1x8x8xf32> to vector<8x8xf32>
    %c0_86 = arith.constant 0 : index
    %c4_87 = arith.constant 4 : index
    %c1_88 = arith.constant 1 : index
    %c0_89 = arith.constant 0 : index
    %70 = vector.load %arg2[%c0_86, %c4_87, %c1_88, %c0_89] : memref<1x16x9x8xf32, #tpu.memory_space<vmem>>, vector<1x1x8x4xf32>
    %71 = vector.shape_cast %70 : vector<1x1x8x4xf32> to vector<8x4xf32>
    %c2_90 = arith.constant 2 : index
    %c0_91 = arith.constant 0 : index
    %c0_92 = arith.constant 0 : index
    %72 = vector.load %arg4[%c2_90, %c0_91, %c0_92] : memref<3x8x4xf32, #tpu.memory_space<vmem>>, vector<1x8x4xf32>
    %73 = vector.shape_cast %72 : vector<1x8x4xf32> to vector<8x4xf32>
    %cst_93 = arith.constant dense<0.000000e+00> : vector<8x4xf32>
    %74 = tpu.matmul %69, %73, %cst_93 {dimension_numbers = #tpu.dot_dimension_numbers<[1], [0], [0], [1], [0, 0, 1, 1], [], []>} : vector<8x8xf32>, vector<8x4xf32>, vector<8x4xf32> -> vector<8x4xf32>
    %75 = arith.addf %67, %74 : vector<8x4xf32>
    %c2_94 = arith.constant 2 : index
    %c0_95 = arith.constant 0 : index
    %c0_96 = arith.constant 0 : index
    %76 = vector.load %arg5[%c2_94, %c0_95, %c0_96] : memref<3x4x4xf32, #tpu.memory_space<vmem>>, vector<1x4x4xf32>
    %77 = vector.shape_cast %76 : vector<1x4x4xf32> to vector<4x4xf32>
    %cst_97 = arith.constant dense<0.000000e+00> : vector<8x4xf32>
    %78 = tpu.matmul %71, %77, %cst_97 {dimension_numbers = #tpu.dot_dimension_numbers<[1], [0], [0], [1], [0, 0, 1, 1], [], []>} : vector<8x4xf32>, vector<4x4xf32>, vector<8x4xf32> -> vector<8x4xf32>
    %79 = arith.addf %75, %78 : vector<8x4xf32>
    %80 = vector.broadcast %0 : vector<1x4xf32> to vector<8x4xf32>
    %81 = arith.addf %79, %80 : vector<8x4xf32>
    %c0_98 = arith.constant 0 : index
    %c1_99 = arith.constant 1 : index
    %c0_100 = arith.constant 0 : index
    %c0_101 = arith.constant 0 : index
    %82 = vector.load %arg7[%c0_98, %c1_99, %c0_100, %c0_101] : memref<1x8x8x4xf32, #tpu.memory_space<vmem>>, vector<1x1x8x4xf32>
    %83 = vector.shape_cast %82 : vector<1x1x8x4xf32> to vector<8x4xf32>
    %84 = vector.shape_cast %81 : vector<8x4xf32> to vector<1x1x8x4xf32>
    tpu.vector_store %arg7[%c0_98, %c1_99, %c0_100, %c0_101], %84 {strides = array<i32>} : memref<1x8x8x4xf32, #tpu.memory_space<vmem>>, vector<1x1x8x4xf32>,
    %cst_102 = arith.constant 0.000000e+00 : f32
    %85 = vector.broadcast %cst_102 : f32 to vector<8x4xf32>
    %c0_103 = arith.constant 0 : index
    %c4_104 = arith.constant 4 : index
    %c0_105 = arith.constant 0 : index
    %c0_106 = arith.constant 0 : index
    %86 = vector.load %arg2[%c0_103, %c4_104, %c0_105, %c0_106] : memref<1x16x9x8xf32, #tpu.memory_space<vmem>>, vector<1x1x8x8xf32>
    %87 = vector.shape_cast %86 : vector<1x1x8x8xf32> to vector<8x8xf32>
    %c0_107 = arith.constant 0 : index
    %c4_108 = arith.constant 4 : index
    %c1_109 = arith.constant 1 : index
    %c0_110 = arith.constant 0 : index
    %88 = vector.load %arg2[%c0_107, %c4_108, %c1_109, %c0_110] : memref<1x16x9x8xf32, #tpu.memory_space<vmem>>, vector<1x1x8x4xf32>
    %89 = vector.shape_cast %88 : vector<1x1x8x4xf32> to vector<8x4xf32>
    %c0_111 = arith.constant 0 : index
    %c0_112 = arith.constant 0 : index
    %c0_113 = arith.constant 0 : index
    %90 = vector.load %arg4[%c0_111, %c0_112, %c0_113] : memref<3x8x4xf32, #tpu.memory_space<vmem>>, vector<1x8x4xf32>
    %91 = vector.shape_cast %90 : vector<1x8x4xf32> to vector<8x4xf32>
    %cst_114 = arith.constant dense<0.000000e+00> : vector<8x4xf32>
    %92 = tpu.matmul %87, %91, %cst_114 {dimension_numbers = #tpu.dot_dimension_numbers<[1], [0], [0], [1], [0, 0, 1, 1], [], []>} : vector<8x8xf32>, vector<8x4xf32>, vector<8x4xf32> -> vector<8x4xf32>
    %93 = arith.addf %85, %92 : vector<8x4xf32>
    %c0_115 = arith.constant 0 : index
    %c0_116 = arith.constant 0 : index
    %c0_117 = arith.constant 0 : index
    %94 = vector.load %arg5[%c0_115, %c0_116, %c0_117] : memref<3x4x4xf32, #tpu.memory_space<vmem>>, vector<1x4x4xf32>
    %95 = vector.shape_cast %94 : vector<1x4x4xf32> to vector<4x4xf32>
    %cst_118 = arith.constant dense<0.000000e+00> : vector<8x4xf32>
    %96 = tpu.matmul %89, %95, %cst_118 {dimension_numbers = #tpu.dot_dimension_numbers<[1], [0], [0], [1], [0, 0, 1, 1], [], []>} : vector<8x4xf32>, vector<4x4xf32>, vector<8x4xf32> -> vector<8x4xf32>
    %97 = arith.addf %93, %96 : vector<8x4xf32>
    %c0_119 = arith.constant 0 : index
    %c5 = arith.constant 5 : index
    %c0_120 = arith.constant 0 : index
    %c0_121 = arith.constant 0 : index
    %98 = vector.load %arg2[%c0_119, %c5, %c0_120, %c0_121] : memref<1x16x9x8xf32, #tpu.memory_space<vmem>>, vector<1x1x8x8xf32>
    %99 = vector.shape_cast %98 : vector<1x1x8x8xf32> to vector<8x8xf32>
    %c0_122 = arith.constant 0 : index
    %c5_123 = arith.constant 5 : index
    %c1_124 = arith.constant 1 : index
    %c0_125 = arith.constant 0 : index
    %100 = vector.load %arg2[%c0_122, %c5_123, %c1_124, %c0_125] : memref<1x16x9x8xf32, #tpu.memory_space<vmem>>, vector<1x1x8x4xf32>
    %101 = vector.shape_cast %100 : vector<1x1x8x4xf32> to vector<8x4xf32>
    %c1_126 = arith.constant 1 : index
    %c0_127 = arith.constant 0 : index
    %c0_128 = arith.constant 0 : index
    %102 = vector.load %arg4[%c1_126, %c0_127, %c0_128] : memref<3x8x4xf32, #tpu.memory_space<vmem>>, vector<1x8x4xf32>
    %103 = vector.shape_cast %102 : vector<1x8x4xf32> to vector<8x4xf32>
    %cst_129 = arith.constant dense<0.000000e+00> : vector<8x4xf32>
    %104 = tpu.matmul %99, %103, %cst_129 {dimension_numbers = #tpu.dot_dimension_numbers<[1], [0], [0], [1], [0, 0, 1, 1], [], []>} : vector<8x8xf32>, vector<8x4xf32>, vector<8x4xf32> -> vector<8x4xf32>
    %105 = arith.addf %97, %104 : vector<8x4xf32>
    %c1_130 = arith.constant 1 : index
    %c0_131 = arith.constant 0 : index
    %c0_132 = arith.constant 0 : index
    %106 = vector.load %arg5[%c1_130, %c0_131, %c0_132] : memref<3x4x4xf32, #tpu.memory_space<vmem>>, vector<1x4x4xf32>
    %107 = vector.shape_cast %106 : vector<1x4x4xf32> to vector<4x4xf32>
    %cst_133 = arith.constant dense<0.000000e+00> : vector<8x4xf32>
    %108 = tpu.matmul %101, %107, %cst_133 {dimension_numbers = #tpu.dot_dimension_numbers<[1], [0], [0], [1], [0, 0, 1, 1], [], []>} : vector<8x4xf32>, vector<4x4xf32>, vector<8x4xf32> -> vector<8x4xf32>
    %109 = arith.addf %105, %108 : vector<8x4xf32>
    %c0_134 = arith.constant 0 : index
    %c6 = arith.constant 6 : index
    %c0_135 = arith.constant 0 : index
    %c0_136 = arith.constant 0 : index
    %110 = vector.load %arg2[%c0_134, %c6, %c0_135, %c0_136] : memref<1x16x9x8xf32, #tpu.memory_space<vmem>>, vector<1x1x8x8xf32>
    %111 = vector.shape_cast %110 : vector<1x1x8x8xf32> to vector<8x8xf32>
    %c0_137 = arith.constant 0 : index
    %c6_138 = arith.constant 6 : index
    %c1_139 = arith.constant 1 : index
    %c0_140 = arith.constant 0 : index
    %112 = vector.load %arg2[%c0_137, %c6_138, %c1_139, %c0_140] : memref<1x16x9x8xf32, #tpu.memory_space<vmem>>, vector<1x1x8x4xf32>
    %113 = vector.shape_cast %112 : vector<1x1x8x4xf32> to vector<8x4xf32>
    %c2_141 = arith.constant 2 : index
    %c0_142 = arith.constant 0 : index
    %c0_143 = arith.constant 0 : index
    %114 = vector.load %arg4[%c2_141, %c0_142, %c0_143] : memref<3x8x4xf32, #tpu.memory_space<vmem>>, vector<1x8x4xf32>
    %115 = vector.shape_cast %114 : vector<1x8x4xf32> to vector<8x4xf32>
    %cst_144 = arith.constant dense<0.000000e+00> : vector<8x4xf32>
    %116 = tpu.matmul %111, %115, %cst_144 {dimension_numbers = #tpu.dot_dimension_numbers<[1], [0], [0], [1], [0, 0, 1, 1], [], []>} : vector<8x8xf32>, vector<8x4xf32>, vector<8x4xf32> -> vector<8x4xf32>
    %117 = arith.addf %109, %116 : vector<8x4xf32>
    %c2_145 = arith.constant 2 : index
    %c0_146 = arith.constant 0 : index
    %c0_147 = arith.constant 0 : index
    %118 = vector.load %arg5[%c2_145, %c0_146, %c0_147] : memref<3x4x4xf32, #tpu.memory_space<vmem>>, vector<1x4x4xf32>
    %119 = vector.shape_cast %118 : vector<1x4x4xf32> to vector<4x4xf32>
    %cst_148 = arith.constant dense<0.000000e+00> : vector<8x4xf32>
    %120 = tpu.matmul %113, %119, %cst_148 {dimension_numbers = #tpu.dot_dimension_numbers<[1], [0], [0], [1], [0, 0, 1, 1], [], []>} : vector<8x4xf32>, vector<4x4xf32>, vector<8x4xf32> -> vector<8x4xf32>
    %121 = arith.addf %117, %120 : vector<8x4xf32>
    %122 = vector.broadcast %0 : vector<1x4xf32> to vector<8x4xf32>
    %123 = arith.addf %121, %122 : vector<8x4xf32>
    %c0_149 = arith.constant 0 : index
    %c2_150 = arith.constant 2 : index
    %c0_151 = arith.constant 0 : index
    %c0_152 = arith.constant 0 : index
    %124 = vector.load %arg7[%c0_149, %c2_150, %c0_151, %c0_152] : memref<1x8x8x4xf32, #tpu.memory_space<vmem>>, vector<1x1x8x4xf32>
    %125 = vector.shape_cast %124 : vector<1x1x8x4xf32> to vector<8x4xf32>
    %126 = vector.shape_cast %123 : vector<8x4xf32> to vector<1x1x8x4xf32>
    tpu.vector_store %arg7[%c0_149, %c2_150, %c0_151, %c0_152], %126 {strides = array<i32>} : memref<1x8x8x4xf32, #tpu.memory_space<vmem>>, vector<1x1x8x4xf32>,
    %cst_153 = arith.constant 0.000000e+00 : f32
    %127 = vector.broadcast %cst_153 : f32 to vector<8x4xf32>
    %c0_154 = arith.constant 0 : index
    %c6_155 = arith.constant 6 : index
    %c0_156 = arith.constant 0 : index
    %c0_157 = arith.constant 0 : index
    %128 = vector.load %arg2[%c0_154, %c6_155, %c0_156, %c0_157] : memref<1x16x9x8xf32, #tpu.memory_space<vmem>>, vector<1x1x8x8xf32>
    %129 = vector.shape_cast %128 : vector<1x1x8x8xf32> to vector<8x8xf32>
    %c0_158 = arith.constant 0 : index
    %c6_159 = arith.constant 6 : index
    %c1_160 = arith.constant 1 : index
    %c0_161 = arith.constant 0 : index
    %130 = vector.load %arg2[%c0_158, %c6_159, %c1_160, %c0_161] : memref<1x16x9x8xf32, #tpu.memory_space<vmem>>, vector<1x1x8x4xf32>
    %131 = vector.shape_cast %130 : vector<1x1x8x4xf32> to vector<8x4xf32>
    %c0_162 = arith.constant 0 : index
    %c0_163 = arith.constant 0 : index
    %c0_164 = arith.constant 0 : index
    %132 = vector.load %arg4[%c0_162, %c0_163, %c0_164] : memref<3x8x4xf32, #tpu.memory_space<vmem>>, vector<1x8x4xf32>
    %133 = vector.shape_cast %132 : vector<1x8x4xf32> to vector<8x4xf32>
    %cst_165 = arith.constant dense<0.000000e+00> : vector<8x4xf32>
    %134 = tpu.matmul %129, %133, %cst_165 {dimension_numbers = #tpu.dot_dimension_numbers<[1], [0], [0], [1], [0, 0, 1, 1], [], []>} : vector<8x8xf32>, vector<8x4xf32>, vector<8x4xf32> -> vector<8x4xf32>
    %135 = arith.addf %127, %134 : vector<8x4xf32>
    %c0_166 = arith.constant 0 : index
    %c0_167 = arith.constant 0 : index
    %c0_168 = arith.constant 0 : index
    %136 = vector.load %arg5[%c0_166, %c0_167, %c0_168] : memref<3x4x4xf32, #tpu.memory_space<vmem>>, vector<1x4x4xf32>
    %137 = vector.shape_cast %136 : vector<1x4x4xf32> to vector<4x4xf32>
    %cst_169 = arith.constant dense<0.000000e+00> : vector<8x4xf32>
    %138 = tpu.matmul %131, %137, %cst_169 {dimension_numbers = #tpu.dot_dimension_numbers<[1], [0], [0], [1], [0, 0, 1, 1], [], []>} : vector<8x4xf32>, vector<4x4xf32>, vector<8x4xf32> -> vector<8x4xf32>
    %139 = arith.addf %135, %138 : vector<8x4xf32>
    %c0_170 = arith.constant 0 : index
    %c7 = arith.constant 7 : index
    %c0_171 = arith.constant 0 : index
    %c0_172 = arith.constant 0 : index
    %140 = vector.load %arg2[%c0_170, %c7, %c0_171, %c0_172] : memref<1x16x9x8xf32, #tpu.memory_space<vmem>>, vector<1x1x8x8xf32>
    %141 = vector.shape_cast %140 : vector<1x1x8x8xf32> to vector<8x8xf32>
    %c0_173 = arith.constant 0 : index
    %c7_174 = arith.constant 7 : index
    %c1_175 = arith.constant 1 : index
    %c0_176 = arith.constant 0 : index
    %142 = vector.load %arg2[%c0_173, %c7_174, %c1_175, %c0_176] : memref<1x16x9x8xf32, #tpu.memory_space<vmem>>, vector<1x1x8x4xf32>
    %143 = vector.shape_cast %142 : vector<1x1x8x4xf32> to vector<8x4xf32>
    %c1_177 = arith.constant 1 : index
    %c0_178 = arith.constant 0 : index
    %c0_179 = arith.constant 0 : index
    %144 = vector.load %arg4[%c1_177, %c0_178, %c0_179] : memref<3x8x4xf32, #tpu.memory_space<vmem>>, vector<1x8x4xf32>
    %145 = vector.shape_cast %144 : vector<1x8x4xf32> to vector<8x4xf32>
    %cst_180 = arith.constant dense<0.000000e+00> : vector<8x4xf32>
    %146 = tpu.matmul %141, %145, %cst_180 {dimension_numbers = #tpu.dot_dimension_numbers<[1], [0], [0], [1], [0, 0, 1, 1], [], []>} : vector<8x8xf32>, vector<8x4xf32>, vector<8x4xf32> -> vector<8x4xf32>
    %147 = arith.addf %139, %146 : vector<8x4xf32>
    %c1_181 = arith.constant 1 : index
    %c0_182 = arith.constant 0 : index
    %c0_183 = arith.constant 0 : index
    %148 = vector.load %arg5[%c1_181, %c0_182, %c0_183] : memref<3x4x4xf32, #tpu.memory_space<vmem>>, vector<1x4x4xf32>
    %149 = vector.shape_cast %148 : vector<1x4x4xf32> to vector<4x4xf32>
    %cst_184 = arith.constant dense<0.000000e+00> : vector<8x4xf32>
    %150 = tpu.matmul %143, %149, %cst_184 {dimension_numbers = #tpu.dot_dimension_numbers<[1], [0], [0], [1], [0, 0, 1, 1], [], []>} : vector<8x4xf32>, vector<4x4xf32>, vector<8x4xf32> -> vector<8x4xf32>
    %151 = arith.addf %147, %150 : vector<8x4xf32>
    %c0_185 = arith.constant 0 : index
    %c8 = arith.constant 8 : index
    %c0_186 = arith.constant 0 : index
    %c0_187 = arith.constant 0 : index
    %152 = vector.load %arg2[%c0_185, %c8, %c0_186, %c0_187] : memref<1x16x9x8xf32, #tpu.memory_space<vmem>>, vector<1x1x8x8xf32>
    %153 = vector.shape_cast %152 : vector<1x1x8x8xf32> to vector<8x8xf32>
    %c0_188 = arith.constant 0 : index
    %c8_189 = arith.constant 8 : index
    %c1_190 = arith.constant 1 : index
    %c0_191 = arith.constant 0 : index
    %154 = vector.load %arg2[%c0_188, %c8_189, %c1_190, %c0_191] : memref<1x16x9x8xf32, #tpu.memory_space<vmem>>, vector<1x1x8x4xf32>
    %155 = vector.shape_cast %154 : vector<1x1x8x4xf32> to vector<8x4xf32>
    %c2_192 = arith.constant 2 : index
    %c0_193 = arith.constant 0 : index
    %c0_194 = arith.constant 0 : index
    %156 = vector.load %arg4[%c2_192, %c0_193, %c0_194] : memref<3x8x4xf32, #tpu.memory_space<vmem>>, vector<1x8x4xf32>
    %157 = vector.shape_cast %156 : vector<1x8x4xf32> to vector<8x4xf32>
    %cst_195 = arith.constant dense<0.000000e+00> : vector<8x4xf32>
    %158 = tpu.matmul %153, %157, %cst_195 {dimension_numbers = #tpu.dot_dimension_numbers<[1], [0], [0], [1], [0, 0, 1, 1], [], []>} : vector<8x8xf32>, vector<8x4xf32>, vector<8x4xf32> -> vector<8x4xf32>
    %159 = arith.addf %151, %158 : vector<8x4xf32>
    %c2_196 = arith.constant 2 : index
    %c0_197 = arith.constant 0 : index
    %c0_198 = arith.constant 0 : index
    %160 = vector.load %arg5[%c2_196, %c0_197, %c0_198] : memref<3x4x4xf32, #tpu.memory_space<vmem>>, vector<1x4x4xf32>
    %161 = vector.shape_cast %160 : vector<1x4x4xf32> to vector<4x4xf32>
    %cst_199 = arith.constant dense<0.000000e+00> : vector<8x4xf32>
    %162 = tpu.matmul %155, %161, %cst_199 {dimension_numbers = #tpu.dot_dimension_numbers<[1], [0], [0], [1], [0, 0, 1, 1], [], []>} : vector<8x4xf32>, vector<4x4xf32>, vector<8x4xf32> -> vector<8x4xf32>
    %163 = arith.addf %159, %162 : vector<8x4xf32>
    %164 = vector.broadcast %0 : vector<1x4xf32> to vector<8x4xf32>
    %165 = arith.addf %163, %164 : vector<8x4xf32>
    %c0_200 = arith.constant 0 : index
    %c3_201 = arith.constant 3 : index
    %c0_202 = arith.constant 0 : index
    %c0_203 = arith.constant 0 : index
    %166 = vector.load %arg7[%c0_200, %c3_201, %c0_202, %c0_203] : memref<1x8x8x4xf32, #tpu.memory_space<vmem>>, vector<1x1x8x4xf32>
    %167 = vector.shape_cast %166 : vector<1x1x8x4xf32> to vector<8x4xf32>
    %168 = vector.shape_cast %165 : vector<8x4xf32> to vector<1x1x8x4xf32>
    tpu.vector_store %arg7[%c0_200, %c3_201, %c0_202, %c0_203], %168 {strides = array<i32>} : memref<1x8x8x4xf32, #tpu.memory_space<vmem>>, vector<1x1x8x4xf32>,
    %cst_204 = arith.constant 0.000000e+00 : f32
    %169 = vector.broadcast %cst_204 : f32 to vector<8x4xf32>
    %c0_205 = arith.constant 0 : index
    %c8_206 = arith.constant 8 : index
    %c0_207 = arith.constant 0 : index
    %c0_208 = arith.constant 0 : index
    %170 = vector.load %arg2[%c0_205, %c8_206, %c0_207, %c0_208] : memref<1x16x9x8xf32, #tpu.memory_space<vmem>>, vector<1x1x8x8xf32>
    %171 = vector.shape_cast %170 : vector<1x1x8x8xf32> to vector<8x8xf32>
    %c0_209 = arith.constant 0 : index
    %c8_210 = arith.constant 8 : index
    %c1_211 = arith.constant 1 : index
    %c0_212 = arith.constant 0 : index
    %172 = vector.load %arg2[%c0_209, %c8_210, %c1_211, %c0_212] : memref<1x16x9x8xf32, #tpu.memory_space<vmem>>, vector<1x1x8x4xf32>
    %173 = vector.shape_cast %172 : vector<1x1x8x4xf32> to vector<8x4xf32>
    %c0_213 = arith.constant 0 : index
    %c0_214 = arith.constant 0 : index
    %c0_215 = arith.constant 0 : index
    %174 = vector.load %arg4[%c0_213, %c0_214, %c0_215] : memref<3x8x4xf32, #tpu.memory_space<vmem>>, vector<1x8x4xf32>
    %175 = vector.shape_cast %174 : vector<1x8x4xf32> to vector<8x4xf32>
    %cst_216 = arith.constant dense<0.000000e+00> : vector<8x4xf32>
    %176 = tpu.matmul %171, %175, %cst_216 {dimension_numbers = #tpu.dot_dimension_numbers<[1], [0], [0], [1], [0, 0, 1, 1], [], []>} : vector<8x8xf32>, vector<8x4xf32>, vector<8x4xf32> -> vector<8x4xf32>
    %177 = arith.addf %169, %176 : vector<8x4xf32>
    %c0_217 = arith.constant 0 : index
    %c0_218 = arith.constant 0 : index
    %c0_219 = arith.constant 0 : index
    %178 = vector.load %arg5[%c0_217, %c0_218, %c0_219] : memref<3x4x4xf32, #tpu.memory_space<vmem>>, vector<1x4x4xf32>
    %179 = vector.shape_cast %178 : vector<1x4x4xf32> to vector<4x4xf32>
    %cst_220 = arith.constant dense<0.000000e+00> : vector<8x4xf32>
    %180 = tpu.matmul %173, %179, %cst_220 {dimension_numbers = #tpu.dot_dimension_numbers<[1], [0], [0], [1], [0, 0, 1, 1], [], []>} : vector<8x4xf32>, vector<4x4xf32>, vector<8x4xf32> -> vector<8x4xf32>
    %181 = arith.addf %177, %180 : vector<8x4xf32>
    %c0_221 = arith.constant 0 : index
    %c9 = arith.constant 9 : index
    %c0_222 = arith.constant 0 : index
    %c0_223 = arith.constant 0 : index
    %182 = vector.load %arg2[%c0_221, %c9, %c0_222, %c0_223] : memref<1x16x9x8xf32, #tpu.memory_space<vmem>>, vector<1x1x8x8xf32>
    %183 = vector.shape_cast %182 : vector<1x1x8x8xf32> to vector<8x8xf32>
    %c0_224 = arith.constant 0 : index
    %c9_225 = arith.constant 9 : index
    %c1_226 = arith.constant 1 : index
    %c0_227 = arith.constant 0 : index
    %184 = vector.load %arg2[%c0_224, %c9_225, %c1_226, %c0_227] : memref<1x16x9x8xf32, #tpu.memory_space<vmem>>, vector<1x1x8x4xf32>
    %185 = vector.shape_cast %184 : vector<1x1x8x4xf32> to vector<8x4xf32>
    %c1_228 = arith.constant 1 : index
    %c0_229 = arith.constant 0 : index
    %c0_230 = arith.constant 0 : index
    %186 = vector.load %arg4[%c1_228, %c0_229, %c0_230] : memref<3x8x4xf32, #tpu.memory_space<vmem>>, vector<1x8x4xf32>
    %187 = vector.shape_cast %186 : vector<1x8x4xf32> to vector<8x4xf32>
    %cst_231 = arith.constant dense<0.000000e+00> : vector<8x4xf32>
    %188 = tpu.matmul %183, %187, %cst_231 {dimension_numbers = #tpu.dot_dimension_numbers<[1], [0], [0], [1], [0, 0, 1, 1], [], []>} : vector<8x8xf32>, vector<8x4xf32>, vector<8x4xf32> -> vector<8x4xf32>
    %189 = arith.addf %181, %188 : vector<8x4xf32>
    %c1_232 = arith.constant 1 : index
    %c0_233 = arith.constant 0 : index
    %c0_234 = arith.constant 0 : index
    %190 = vector.load %arg5[%c1_232, %c0_233, %c0_234] : memref<3x4x4xf32, #tpu.memory_space<vmem>>, vector<1x4x4xf32>
    %191 = vector.shape_cast %190 : vector<1x4x4xf32> to vector<4x4xf32>
    %cst_235 = arith.constant dense<0.000000e+00> : vector<8x4xf32>
    %192 = tpu.matmul %185, %191, %cst_235 {dimension_numbers = #tpu.dot_dimension_numbers<[1], [0], [0], [1], [0, 0, 1, 1], [], []>} : vector<8x4xf32>, vector<4x4xf32>, vector<8x4xf32> -> vector<8x4xf32>
    %193 = arith.addf %189, %192 : vector<8x4xf32>
    %c0_236 = arith.constant 0 : index
    %c10 = arith.constant 10 : index
    %c0_237 = arith.constant 0 : index
    %c0_238 = arith.constant 0 : index
    %194 = vector.load %arg2[%c0_236, %c10, %c0_237, %c0_238] : memref<1x16x9x8xf32, #tpu.memory_space<vmem>>, vector<1x1x8x8xf32>
    %195 = vector.shape_cast %194 : vector<1x1x8x8xf32> to vector<8x8xf32>
    %c0_239 = arith.constant 0 : index
    %c10_240 = arith.constant 10 : index
    %c1_241 = arith.constant 1 : index
    %c0_242 = arith.constant 0 : index
    %196 = vector.load %arg2[%c0_239, %c10_240, %c1_241, %c0_242] : memref<1x16x9x8xf32, #tpu.memory_space<vmem>>, vector<1x1x8x4xf32>
    %197 = vector.shape_cast %196 : vector<1x1x8x4xf32> to vector<8x4xf32>
    %c2_243 = arith.constant 2 : index
    %c0_244 = arith.constant 0 : index
    %c0_245 = arith.constant 0 : index
    %198 = vector.load %arg4[%c2_243, %c0_244, %c0_245] : memref<3x8x4xf32, #tpu.memory_space<vmem>>, vector<1x8x4xf32>
    %199 = vector.shape_cast %198 : vector<1x8x4xf32> to vector<8x4xf32>
    %cst_246 = arith.constant dense<0.000000e+00> : vector<8x4xf32>
    %200 = tpu.matmul %195, %199, %cst_246 {dimension_numbers = #tpu.dot_dimension_numbers<[1], [0], [0], [1], [0, 0, 1, 1], [], []>} : vector<8x8xf32>, vector<8x4xf32>, vector<8x4xf32> -> vector<8x4xf32>
    %201 = arith.addf %193, %200 : vector<8x4xf32>
    %c2_247 = arith.constant 2 : index
    %c0_248 = arith.constant 0 : index
    %c0_249 = arith.constant 0 : index
    %202 = vector.load %arg5[%c2_247, %c0_248, %c0_249] : memref<3x4x4xf32, #tpu.memory_space<vmem>>, vector<1x4x4xf32>
    %203 = vector.shape_cast %202 : vector<1x4x4xf32> to vector<4x4xf32>
    %cst_250 = arith.constant dense<0.000000e+00> : vector<8x4xf32>
    %204 = tpu.matmul %197, %203, %cst_250 {dimension_numbers = #tpu.dot_dimension_numbers<[1], [0], [0], [1], [0, 0, 1, 1], [], []>} : vector<8x4xf32>, vector<4x4xf32>, vector<8x4xf32> -> vector<8x4xf32>
    %205 = arith.addf %201, %204 : vector<8x4xf32>
    %206 = vector.broadcast %0 : vector<1x4xf32> to vector<8x4xf32>
    %207 = arith.addf %205, %206 : vector<8x4xf32>
    %c0_251 = arith.constant 0 : index
    %c4_252 = arith.constant 4 : index
    %c0_253 = arith.constant 0 : index
    %c0_254 = arith.constant 0 : index
    %208 = vector.load %arg7[%c0_251, %c4_252, %c0_253, %c0_254] : memref<1x8x8x4xf32, #tpu.memory_space<vmem>>, vector<1x1x8x4xf32>
    %209 = vector.shape_cast %208 : vector<1x1x8x4xf32> to vector<8x4xf32>
    %210 = vector.shape_cast %207 : vector<8x4xf32> to vector<1x1x8x4xf32>
    tpu.vector_store %arg7[%c0_251, %c4_252, %c0_253, %c0_254], %210 {strides = array<i32>} : memref<1x8x8x4xf32, #tpu.memory_space<vmem>>, vector<1x1x8x4xf32>,
    %cst_255 = arith.constant 0.000000e+00 : f32
    %211 = vector.broadcast %cst_255 : f32 to vector<8x4xf32>
    %c0_256 = arith.constant 0 : index
    %c10_257 = arith.constant 10 : index
    %c0_258 = arith.constant 0 : index
    %c0_259 = arith.constant 0 : index
    %212 = vector.load %arg2[%c0_256, %c10_257, %c0_258, %c0_259] : memref<1x16x9x8xf32, #tpu.memory_space<vmem>>, vector<1x1x8x8xf32>
    %213 = vector.shape_cast %212 : vector<1x1x8x8xf32> to vector<8x8xf32>
    %c0_260 = arith.constant 0 : index
    %c10_261 = arith.constant 10 : index
    %c1_262 = arith.constant 1 : index
    %c0_263 = arith.constant 0 : index
    %214 = vector.load %arg2[%c0_260, %c10_261, %c1_262, %c0_263] : memref<1x16x9x8xf32, #tpu.memory_space<vmem>>, vector<1x1x8x4xf32>
    %215 = vector.shape_cast %214 : vector<1x1x8x4xf32> to vector<8x4xf32>
    %c0_264 = arith.constant 0 : index
    %c0_265 = arith.constant 0 : index
    %c0_266 = arith.constant 0 : index
    %216 = vector.load %arg4[%c0_264, %c0_265, %c0_266] : memref<3x8x4xf32, #tpu.memory_space<vmem>>, vector<1x8x4xf32>
    %217 = vector.shape_cast %216 : vector<1x8x4xf32> to vector<8x4xf32>
    %cst_267 = arith.constant dense<0.000000e+00> : vector<8x4xf32>
    %218 = tpu.matmul %213, %217, %cst_267 {dimension_numbers = #tpu.dot_dimension_numbers<[1], [0], [0], [1], [0, 0, 1, 1], [], []>} : vector<8x8xf32>, vector<8x4xf32>, vector<8x4xf32> -> vector<8x4xf32>
    %219 = arith.addf %211, %218 : vector<8x4xf32>
    %c0_268 = arith.constant 0 : index
    %c0_269 = arith.constant 0 : index
    %c0_270 = arith.constant 0 : index
    %220 = vector.load %arg5[%c0_268, %c0_269, %c0_270] : memref<3x4x4xf32, #tpu.memory_space<vmem>>, vector<1x4x4xf32>
    %221 = vector.shape_cast %220 : vector<1x4x4xf32> to vector<4x4xf32>
    %cst_271 = arith.constant dense<0.000000e+00> : vector<8x4xf32>
    %222 = tpu.matmul %215, %221, %cst_271 {dimension_numbers = #tpu.dot_dimension_numbers<[1], [0], [0], [1], [0, 0, 1, 1], [], []>} : vector<8x4xf32>, vector<4x4xf32>, vector<8x4xf32> -> vector<8x4xf32>
    %223 = arith.addf %219, %222 : vector<8x4xf32>
    %c0_272 = arith.constant 0 : index
    %c11 = arith.constant 11 : index
    %c0_273 = arith.constant 0 : index
    %c0_274 = arith.constant 0 : index
    %224 = vector.load %arg2[%c0_272, %c11, %c0_273, %c0_274] : memref<1x16x9x8xf32, #tpu.memory_space<vmem>>, vector<1x1x8x8xf32>
    %225 = vector.shape_cast %224 : vector<1x1x8x8xf32> to vector<8x8xf32>
    %c0_275 = arith.constant 0 : index
    %c11_276 = arith.constant 11 : index
    %c1_277 = arith.constant 1 : index
    %c0_278 = arith.constant 0 : index
    %226 = vector.load %arg2[%c0_275, %c11_276, %c1_277, %c0_278] : memref<1x16x9x8xf32, #tpu.memory_space<vmem>>, vector<1x1x8x4xf32>
    %227 = vector.shape_cast %226 : vector<1x1x8x4xf32> to vector<8x4xf32>
    %c1_279 = arith.constant 1 : index
    %c0_280 = arith.constant 0 : index
    %c0_281 = arith.constant 0 : index
    %228 = vector.load %arg4[%c1_279, %c0_280, %c0_281] : memref<3x8x4xf32, #tpu.memory_space<vmem>>, vector<1x8x4xf32>
    %229 = vector.shape_cast %228 : vector<1x8x4xf32> to vector<8x4xf32>
    %cst_282 = arith.constant dense<0.000000e+00> : vector<8x4xf32>
    %230 = tpu.matmul %225, %229, %cst_282 {dimension_numbers = #tpu.dot_dimension_numbers<[1], [0], [0], [1], [0, 0, 1, 1], [], []>} : vector<8x8xf32>, vector<8x4xf32>, vector<8x4xf32> -> vector<8x4xf32>
    %231 = arith.addf %223, %230 : vector<8x4xf32>
    %c1_283 = arith.constant 1 : index
    %c0_284 = arith.constant 0 : index
    %c0_285 = arith.constant 0 : index
    %232 = vector.load %arg5[%c1_283, %c0_284, %c0_285] : memref<3x4x4xf32, #tpu.memory_space<vmem>>, vector<1x4x4xf32>
    %233 = vector.shape_cast %232 : vector<1x4x4xf32> to vector<4x4xf32>
    %cst_286 = arith.constant dense<0.000000e+00> : vector<8x4xf32>
    %234 = tpu.matmul %227, %233, %cst_286 {dimension_numbers = #tpu.dot_dimension_numbers<[1], [0], [0], [1], [0, 0, 1, 1], [], []>} : vector<8x4xf32>, vector<4x4xf32>, vector<8x4xf32> -> vector<8x4xf32>
    %235 = arith.addf %231, %234 : vector<8x4xf32>
    %c0_287 = arith.constant 0 : index
    %c12 = arith.constant 12 : index
    %c0_288 = arith.constant 0 : index
    %c0_289 = arith.constant 0 : index
    %236 = vector.load %arg2[%c0_287, %c12, %c0_288, %c0_289] : memref<1x16x9x8xf32, #tpu.memory_space<vmem>>, vector<1x1x8x8xf32>
    %237 = vector.shape_cast %236 : vector<1x1x8x8xf32> to vector<8x8xf32>
    %c0_290 = arith.constant 0 : index
    %c12_291 = arith.constant 12 : index
    %c1_292 = arith.constant 1 : index
    %c0_293 = arith.constant 0 : index
    %238 = vector.load %arg2[%c0_290, %c12_291, %c1_292, %c0_293] : memref<1x16x9x8xf32, #tpu.memory_space<vmem>>, vector<1x1x8x4xf32>
    %239 = vector.shape_cast %238 : vector<1x1x8x4xf32> to vector<8x4xf32>
    %c2_294 = arith.constant 2 : index
    %c0_295 = arith.constant 0 : index
    %c0_296 = arith.constant 0 : index
    %240 = vector.load %arg4[%c2_294, %c0_295, %c0_296] : memref<3x8x4xf32, #tpu.memory_space<vmem>>, vector<1x8x4xf32>
    %241 = vector.shape_cast %240 : vector<1x8x4xf32> to vector<8x4xf32>
    %cst_297 = arith.constant dense<0.000000e+00> : vector<8x4xf32>
    %242 = tpu.matmul %237, %241, %cst_297 {dimension_numbers = #tpu.dot_dimension_numbers<[1], [0], [0], [1], [0, 0, 1, 1], [], []>} : vector<8x8xf32>, vector<8x4xf32>, vector<8x4xf32> -> vector<8x4xf32>
    %243 = arith.addf %235, %242 : vector<8x4xf32>
    %c2_298 = arith.constant 2 : index
    %c0_299 = arith.constant 0 : index
    %c0_300 = arith.constant 0 : index
    %244 = vector.load %arg5[%c2_298, %c0_299, %c0_300] : memref<3x4x4xf32, #tpu.memory_space<vmem>>, vector<1x4x4xf32>
    %245 = vector.shape_cast %244 : vector<1x4x4xf32> to vector<4x4xf32>
    %cst_301 = arith.constant dense<0.000000e+00> : vector<8x4xf32>
    %246 = tpu.matmul %239, %245, %cst_301 {dimension_numbers = #tpu.dot_dimension_numbers<[1], [0], [0], [1], [0, 0, 1, 1], [], []>} : vector<8x4xf32>, vector<4x4xf32>, vector<8x4xf32> -> vector<8x4xf32>
    %247 = arith.addf %243, %246 : vector<8x4xf32>
    %248 = vector.broadcast %0 : vector<1x4xf32> to vector<8x4xf32>
    %249 = arith.addf %247, %248 : vector<8x4xf32>
    %c0_302 = arith.constant 0 : index
    %c5_303 = arith.constant 5 : index
    %c0_304 = arith.constant 0 : index
    %c0_305 = arith.constant 0 : index
    %250 = vector.load %arg7[%c0_302, %c5_303, %c0_304, %c0_305] : memref<1x8x8x4xf32, #tpu.memory_space<vmem>>, vector<1x1x8x4xf32>
    %251 = vector.shape_cast %250 : vector<1x1x8x4xf32> to vector<8x4xf32>
    %252 = vector.shape_cast %249 : vector<8x4xf32> to vector<1x1x8x4xf32>
    tpu.vector_store %arg7[%c0_302, %c5_303, %c0_304, %c0_305], %252 {strides = array<i32>} : memref<1x8x8x4xf32, #tpu.memory_space<vmem>>, vector<1x1x8x4xf32>,
    %cst_306 = arith.constant 0.000000e+00 : f32
    %253 = vector.broadcast %cst_306 : f32 to vector<8x4xf32>
    %c0_307 = arith.constant 0 : index
    %c12_308 = arith.constant 12 : index
    %c0_309 = arith.constant 0 : index
    %c0_310 = arith.constant 0 : index
    %254 = vector.load %arg2[%c0_307, %c12_308, %c0_309, %c0_310] : memref<1x16x9x8xf32, #tpu.memory_space<vmem>>, vector<1x1x8x8xf32>
    %255 = vector.shape_cast %254 : vector<1x1x8x8xf32> to vector<8x8xf32>
    %c0_311 = arith.constant 0 : index
    %c12_312 = arith.constant 12 : index
    %c1_313 = arith.constant 1 : index
    %c0_314 = arith.constant 0 : index
    %256 = vector.load %arg2[%c0_311, %c12_312, %c1_313, %c0_314] : memref<1x16x9x8xf32, #tpu.memory_space<vmem>>, vector<1x1x8x4xf32>
    %257 = vector.shape_cast %256 : vector<1x1x8x4xf32> to vector<8x4xf32>
    %c0_315 = arith.constant 0 : index
    %c0_316 = arith.constant 0 : index
    %c0_317 = arith.constant 0 : index
    %258 = vector.load %arg4[%c0_315, %c0_316, %c0_317] : memref<3x8x4xf32, #tpu.memory_space<vmem>>, vector<1x8x4xf32>
    %259 = vector.shape_cast %258 : vector<1x8x4xf32> to vector<8x4xf32>
    %cst_318 = arith.constant dense<0.000000e+00> : vector<8x4xf32>
    %260 = tpu.matmul %255, %259, %cst_318 {dimension_numbers = #tpu.dot_dimension_numbers<[1], [0], [0], [1], [0, 0, 1, 1], [], []>} : vector<8x8xf32>, vector<8x4xf32>, vector<8x4xf32> -> vector<8x4xf32>
    %261 = arith.addf %253, %260 : vector<8x4xf32>
    %c0_319 = arith.constant 0 : index
    %c0_320 = arith.constant 0 : index
    %c0_321 = arith.constant 0 : index
    %262 = vector.load %arg5[%c0_319, %c0_320, %c0_321] : memref<3x4x4xf32, #tpu.memory_space<vmem>>, vector<1x4x4xf32>
    %263 = vector.shape_cast %262 : vector<1x4x4xf32> to vector<4x4xf32>
    %cst_322 = arith.constant dense<0.000000e+00> : vector<8x4xf32>
    %264 = tpu.matmul %257, %263, %cst_322 {dimension_numbers = #tpu.dot_dimension_numbers<[1], [0], [0], [1], [0, 0, 1, 1], [], []>} : vector<8x4xf32>, vector<4x4xf32>, vector<8x4xf32> -> vector<8x4xf32>
    %265 = arith.addf %261, %264 : vector<8x4xf32>
    %c0_323 = arith.constant 0 : index
    %c13 = arith.constant 13 : index
    %c0_324 = arith.constant 0 : index
    %c0_325 = arith.constant 0 : index
    %266 = vector.load %arg2[%c0_323, %c13, %c0_324, %c0_325] : memref<1x16x9x8xf32, #tpu.memory_space<vmem>>, vector<1x1x8x8xf32>
    %267 = vector.shape_cast %266 : vector<1x1x8x8xf32> to vector<8x8xf32>
    %c0_326 = arith.constant 0 : index
    %c13_327 = arith.constant 13 : index
    %c1_328 = arith.constant 1 : index
    %c0_329 = arith.constant 0 : index
    %268 = vector.load %arg2[%c0_326, %c13_327, %c1_328, %c0_329] : memref<1x16x9x8xf32, #tpu.memory_space<vmem>>, vector<1x1x8x4xf32>
    %269 = vector.shape_cast %268 : vector<1x1x8x4xf32> to vector<8x4xf32>
    %c1_330 = arith.constant 1 : index
    %c0_331 = arith.constant 0 : index
    %c0_332 = arith.constant 0 : index
    %270 = vector.load %arg4[%c1_330, %c0_331, %c0_332] : memref<3x8x4xf32, #tpu.memory_space<vmem>>, vector<1x8x4xf32>
    %271 = vector.shape_cast %270 : vector<1x8x4xf32> to vector<8x4xf32>
    %cst_333 = arith.constant dense<0.000000e+00> : vector<8x4xf32>
    %272 = tpu.matmul %267, %271, %cst_333 {dimension_numbers = #tpu.dot_dimension_numbers<[1], [0], [0], [1], [0, 0, 1, 1], [], []>} : vector<8x8xf32>, vector<8x4xf32>, vector<8x4xf32> -> vector<8x4xf32>
    %273 = arith.addf %265, %272 : vector<8x4xf32>
    %c1_334 = arith.constant 1 : index
    %c0_335 = arith.constant 0 : index
    %c0_336 = arith.constant 0 : index
    %274 = vector.load %arg5[%c1_334, %c0_335, %c0_336] : memref<3x4x4xf32, #tpu.memory_space<vmem>>, vector<1x4x4xf32>
    %275 = vector.shape_cast %274 : vector<1x4x4xf32> to vector<4x4xf32>
    %cst_337 = arith.constant dense<0.000000e+00> : vector<8x4xf32>
    %276 = tpu.matmul %269, %275, %cst_337 {dimension_numbers = #tpu.dot_dimension_numbers<[1], [0], [0], [1], [0, 0, 1, 1], [], []>} : vector<8x4xf32>, vector<4x4xf32>, vector<8x4xf32> -> vector<8x4xf32>
    %277 = arith.addf %273, %276 : vector<8x4xf32>
    %c0_338 = arith.constant 0 : index
    %c14 = arith.constant 14 : index
    %c0_339 = arith.constant 0 : index
    %c0_340 = arith.constant 0 : index
    %278 = vector.load %arg2[%c0_338, %c14, %c0_339, %c0_340] : memref<1x16x9x8xf32, #tpu.memory_space<vmem>>, vector<1x1x8x8xf32>
    %279 = vector.shape_cast %278 : vector<1x1x8x8xf32> to vector<8x8xf32>
    %c0_341 = arith.constant 0 : index
    %c14_342 = arith.constant 14 : index
    %c1_343 = arith.constant 1 : index
    %c0_344 = arith.constant 0 : index
    %280 = vector.load %arg2[%c0_341, %c14_342, %c1_343, %c0_344] : memref<1x16x9x8xf32, #tpu.memory_space<vmem>>, vector<1x1x8x4xf32>
    %281 = vector.shape_cast %280 : vector<1x1x8x4xf32> to vector<8x4xf32>
    %c2_345 = arith.constant 2 : index
    %c0_346 = arith.constant 0 : index
    %c0_347 = arith.constant 0 : index
    %282 = vector.load %arg4[%c2_345, %c0_346, %c0_347] : memref<3x8x4xf32, #tpu.memory_space<vmem>>, vector<1x8x4xf32>
    %283 = vector.shape_cast %282 : vector<1x8x4xf32> to vector<8x4xf32>
    %cst_348 = arith.constant dense<0.000000e+00> : vector<8x4xf32>
    %284 = tpu.matmul %279, %283, %cst_348 {dimension_numbers = #tpu.dot_dimension_numbers<[1], [0], [0], [1], [0, 0, 1, 1], [], []>} : vector<8x8xf32>, vector<8x4xf32>, vector<8x4xf32> -> vector<8x4xf32>
    %285 = arith.addf %277, %284 : vector<8x4xf32>
    %c2_349 = arith.constant 2 : index
    %c0_350 = arith.constant 0 : index
    %c0_351 = arith.constant 0 : index
    %286 = vector.load %arg5[%c2_349, %c0_350, %c0_351] : memref<3x4x4xf32, #tpu.memory_space<vmem>>, vector<1x4x4xf32>
    %287 = vector.shape_cast %286 : vector<1x4x4xf32> to vector<4x4xf32>
    %cst_352 = arith.constant dense<0.000000e+00> : vector<8x4xf32>
    %288 = tpu.matmul %281, %287, %cst_352 {dimension_numbers = #tpu.dot_dimension_numbers<[1], [0], [0], [1], [0, 0, 1, 1], [], []>} : vector<8x4xf32>, vector<4x4xf32>, vector<8x4xf32> -> vector<8x4xf32>
    %289 = arith.addf %285, %288 : vector<8x4xf32>
    %290 = vector.broadcast %0 : vector<1x4xf32> to vector<8x4xf32>
    %291 = arith.addf %289, %290 : vector<8x4xf32>
    %c0_353 = arith.constant 0 : index
    %c6_354 = arith.constant 6 : index
    %c0_355 = arith.constant 0 : index
    %c0_356 = arith.constant 0 : index
    %292 = vector.load %arg7[%c0_353, %c6_354, %c0_355, %c0_356] : memref<1x8x8x4xf32, #tpu.memory_space<vmem>>, vector<1x1x8x4xf32>
    %293 = vector.shape_cast %292 : vector<1x1x8x4xf32> to vector<8x4xf32>
    %294 = vector.shape_cast %291 : vector<8x4xf32> to vector<1x1x8x4xf32>
    tpu.vector_store %arg7[%c0_353, %c6_354, %c0_355, %c0_356], %294 {strides = array<i32>} : memref<1x8x8x4xf32, #tpu.memory_space<vmem>>, vector<1x1x8x4xf32>,
    %cst_357 = arith.constant 0.000000e+00 : f32
    %295 = vector.broadcast %cst_357 : f32 to vector<8x4xf32>
    %c0_358 = arith.constant 0 : index
    %c14_359 = arith.constant 14 : index
    %c0_360 = arith.constant 0 : index
    %c0_361 = arith.constant 0 : index
    %296 = vector.load %arg2[%c0_358, %c14_359, %c0_360, %c0_361] : memref<1x16x9x8xf32, #tpu.memory_space<vmem>>, vector<1x1x8x8xf32>
    %297 = vector.shape_cast %296 : vector<1x1x8x8xf32> to vector<8x8xf32>
    %c0_362 = arith.constant 0 : index
    %c14_363 = arith.constant 14 : index
    %c1_364 = arith.constant 1 : index
    %c0_365 = arith.constant 0 : index
    %298 = vector.load %arg2[%c0_362, %c14_363, %c1_364, %c0_365] : memref<1x16x9x8xf32, #tpu.memory_space<vmem>>, vector<1x1x8x4xf32>
    %299 = vector.shape_cast %298 : vector<1x1x8x4xf32> to vector<8x4xf32>
    %c0_366 = arith.constant 0 : index
    %c0_367 = arith.constant 0 : index
    %c0_368 = arith.constant 0 : index
    %300 = vector.load %arg4[%c0_366, %c0_367, %c0_368] : memref<3x8x4xf32, #tpu.memory_space<vmem>>, vector<1x8x4xf32>
    %301 = vector.shape_cast %300 : vector<1x8x4xf32> to vector<8x4xf32>
    %cst_369 = arith.constant dense<0.000000e+00> : vector<8x4xf32>
    %302 = tpu.matmul %297, %301, %cst_369 {dimension_numbers = #tpu.dot_dimension_numbers<[1], [0], [0], [1], [0, 0, 1, 1], [], []>} : vector<8x8xf32>, vector<8x4xf32>, vector<8x4xf32> -> vector<8x4xf32>
    %303 = arith.addf %295, %302 : vector<8x4xf32>
    %c0_370 = arith.constant 0 : index
    %c0_371 = arith.constant 0 : index
    %c0_372 = arith.constant 0 : index
    %304 = vector.load %arg5[%c0_370, %c0_371, %c0_372] : memref<3x4x4xf32, #tpu.memory_space<vmem>>, vector<1x4x4xf32>
    %305 = vector.shape_cast %304 : vector<1x4x4xf32> to vector<4x4xf32>
    %cst_373 = arith.constant dense<0.000000e+00> : vector<8x4xf32>
    %306 = tpu.matmul %299, %305, %cst_373 {dimension_numbers = #tpu.dot_dimension_numbers<[1], [0], [0], [1], [0, 0, 1, 1], [], []>} : vector<8x4xf32>, vector<4x4xf32>, vector<8x4xf32> -> vector<8x4xf32>
    %307 = arith.addf %303, %306 : vector<8x4xf32>
    %c0_374 = arith.constant 0 : index
    %c15 = arith.constant 15 : index
    %c0_375 = arith.constant 0 : index
    %c0_376 = arith.constant 0 : index
    %308 = vector.load %arg2[%c0_374, %c15, %c0_375, %c0_376] : memref<1x16x9x8xf32, #tpu.memory_space<vmem>>, vector<1x1x8x8xf32>
    %309 = vector.shape_cast %308 : vector<1x1x8x8xf32> to vector<8x8xf32>
    %c0_377 = arith.constant 0 : index
    %c15_378 = arith.constant 15 : index
    %c1_379 = arith.constant 1 : index
    %c0_380 = arith.constant 0 : index
    %310 = vector.load %arg2[%c0_377, %c15_378, %c1_379, %c0_380] : memref<1x16x9x8xf32, #tpu.memory_space<vmem>>, vector<1x1x8x4xf32>
    %311 = vector.shape_cast %310 : vector<1x1x8x4xf32> to vector<8x4xf32>
    %c1_381 = arith.constant 1 : index
    %c0_382 = arith.constant 0 : index
    %c0_383 = arith.constant 0 : index
    %312 = vector.load %arg4[%c1_381, %c0_382, %c0_383] : memref<3x8x4xf32, #tpu.memory_space<vmem>>, vector<1x8x4xf32>
    %313 = vector.shape_cast %312 : vector<1x8x4xf32> to vector<8x4xf32>
    %cst_384 = arith.constant dense<0.000000e+00> : vector<8x4xf32>
    %314 = tpu.matmul %309, %313, %cst_384 {dimension_numbers = #tpu.dot_dimension_numbers<[1], [0], [0], [1], [0, 0, 1, 1], [], []>} : vector<8x8xf32>, vector<8x4xf32>, vector<8x4xf32> -> vector<8x4xf32>
    %315 = arith.addf %307, %314 : vector<8x4xf32>
    %c1_385 = arith.constant 1 : index
    %c0_386 = arith.constant 0 : index
    %c0_387 = arith.constant 0 : index
    %316 = vector.load %arg5[%c1_385, %c0_386, %c0_387] : memref<3x4x4xf32, #tpu.memory_space<vmem>>, vector<1x4x4xf32>
    %317 = vector.shape_cast %316 : vector<1x4x4xf32> to vector<4x4xf32>
    %cst_388 = arith.constant dense<0.000000e+00> : vector<8x4xf32>
    %318 = tpu.matmul %311, %317, %cst_388 {dimension_numbers = #tpu.dot_dimension_numbers<[1], [0], [0], [1], [0, 0, 1, 1], [], []>} : vector<8x4xf32>, vector<4x4xf32>, vector<8x4xf32> -> vector<8x4xf32>
    %319 = arith.addf %315, %318 : vector<8x4xf32>
    %c0_389 = arith.constant 0 : index
    %c0_390 = arith.constant 0 : index
    %c0_391 = arith.constant 0 : index
    %c0_392 = arith.constant 0 : index
    %320 = vector.load %arg3[%c0_389, %c0_390, %c0_391, %c0_392] : memref<1x1x9x8xf32, #tpu.memory_space<vmem>>, vector<1x1x8x8xf32>
    %321 = vector.shape_cast %320 : vector<1x1x8x8xf32> to vector<8x8xf32>
    %c0_393 = arith.constant 0 : index
    %c0_394 = arith.constant 0 : index
    %c1_395 = arith.constant 1 : index
    %c0_396 = arith.constant 0 : index
    %322 = vector.load %arg3[%c0_393, %c0_394, %c1_395, %c0_396] : memref<1x1x9x8xf32, #tpu.memory_space<vmem>>, vector<1x1x8x4xf32>
    %323 = vector.shape_cast %322 : vector<1x1x8x4xf32> to vector<8x4xf32>
    %c2_397 = arith.constant 2 : index
    %c0_398 = arith.constant 0 : index
    %c0_399 = arith.constant 0 : index
    %324 = vector.load %arg4[%c2_397, %c0_398, %c0_399] : memref<3x8x4xf32, #tpu.memory_space<vmem>>, vector<1x8x4xf32>
    %325 = vector.shape_cast %324 : vector<1x8x4xf32> to vector<8x4xf32>
    %cst_400 = arith.constant dense<0.000000e+00> : vector<8x4xf32>
    %326 = tpu.matmul %321, %325, %cst_400 {dimension_numbers = #tpu.dot_dimension_numbers<[1], [0], [0], [1], [0, 0, 1, 1], [], []>} : vector<8x8xf32>, vector<8x4xf32>, vector<8x4xf32> -> vector<8x4xf32>
    %327 = arith.addf %319, %326 : vector<8x4xf32>
    %c2_401 = arith.constant 2 : index
    %c0_402 = arith.constant 0 : index
    %c0_403 = arith.constant 0 : index
    %328 = vector.load %arg5[%c2_401, %c0_402, %c0_403] : memref<3x4x4xf32, #tpu.memory_space<vmem>>, vector<1x4x4xf32>
    %329 = vector.shape_cast %328 : vector<1x4x4xf32> to vector<4x4xf32>
    %cst_404 = arith.constant dense<0.000000e+00> : vector<8x4xf32>
    %330 = tpu.matmul %323, %329, %cst_404 {dimension_numbers = #tpu.dot_dimension_numbers<[1], [0], [0], [1], [0, 0, 1, 1], [], []>} : vector<8x4xf32>, vector<4x4xf32>, vector<8x4xf32> -> vector<8x4xf32>
    %331 = arith.addf %327, %330 : vector<8x4xf32>
    %332 = vector.broadcast %0 : vector<1x4xf32> to vector<8x4xf32>
    %333 = arith.addf %331, %332 : vector<8x4xf32>
    %c0_405 = arith.constant 0 : index
    %c7_406 = arith.constant 7 : index
    %c0_407 = arith.constant 0 : index
    %c0_408 = arith.constant 0 : index
    %334 = vector.load %arg7[%c0_405, %c7_406, %c0_407, %c0_408] : memref<1x8x8x4xf32, #tpu.memory_space<vmem>>, vector<1x1x8x4xf32>
    %335 = vector.shape_cast %334 : vector<1x1x8x4xf32> to vector<8x4xf32>
    %336 = vector.shape_cast %333 : vector<8x4xf32> to vector<1x1x8x4xf32>
    tpu.vector_store %arg7[%c0_405, %c7_406, %c0_407, %c0_408], %336 {strides = array<i32>} : memref<1x8x8x4xf32, #tpu.memory_space<vmem>>, vector<1x1x8x4xf32>,
    return
  }
  func.func @transform_0(%arg0: i32, %arg1: i32) -> (i32, i32, i32, i32) {
    %c0_i32 = arith.constant 0 : i32
    %c0_i32_0 = arith.constant 0 : i32
    %c0_i32_1 = arith.constant 0 : i32
    return %arg0, %arg1, %c0_i32, %c0_i32_0 : i32, i32, i32, i32
  }
  func.func @transform_1(%arg0: i32, %arg1: i32) -> (i32, i32, i32, i32) {
    %c1_i32 = arith.constant 1 : i32
    %0 = arith.addi %arg1, %c1_i32 : i32
    %c16_i32 = arith.constant 16 : i32
    %1 = arith.muli %c16_i32, %0 : i32
    %c0_i32 = arith.constant 0 : i32
    %c0_i32_0 = arith.constant 0 : i32
    %c0_i32_1 = arith.constant 0 : i32
    return %arg0, %1, %c0_i32, %c0_i32_0 : i32, i32, i32, i32
  }
  func.func @transform_2(%arg0: i32, %arg1: i32) -> (i32, i32, i32) {
    %c0_i32 = arith.constant 0 : i32
    %c0_i32_0 = arith.constant 0 : i32
    %c0_i32_1 = arith.constant 0 : i32
    %c0_i32_2 = arith.constant 0 : i32
    return %c0_i32, %c0_i32_0, %c0_i32_1 : i32, i32, i32
  }
  func.func @transform_3(%arg0: i32, %arg1: i32) -> (i32, i32, i32) {
    %c0_i32 = arith.constant 0 : i32
    %c0_i32_0 = arith.constant 0 : i32
    %c0_i32_1 = arith.constant 0 : i32
    %c0_i32_2 = arith.constant 0 : i32
    return %c0_i32, %c0_i32_0, %c0_i32_1 : i32, i32, i32
  }
  func.func @transform_4(%arg0: i32, %arg1: i32) -> (i32, i32) {
    %c0_i32 = arith.constant 0 : i32
    %c0_i32_0 = arith.constant 0 : i32
    %c0_i32_1 = arith.constant 0 : i32
    return %c0_i32, %c0_i32_0 : i32, i32
  }
  func.func @transform_5(%arg0: i32, %arg1: i32) -> (i32, i32, i32, i32) {
    %c0_i32 = arith.constant 0 : i32
    %c0_i32_0 = arith.constant 0 : i32
    %c0_i32_1 = arith.constant 0 : i32
    return %arg0, %arg1, %c0_i32, %c0_i32_0 : i32, i32, i32, i32
  }
}

</mosaic_0001>

<bundles_post_ra>
// kernel: downsample_forward.1
= control target key start
LH: loop header
LB: loop body
LE: loop exit
PB: predicated region body
PF: predicated region fallthrough
CT: control target
= control target key end

     0   :  { %s4798_s18 = smov 0   ;;  %s4800_s19 = smov 0   ;;  %s5234_s0 = inlined_call_operand.vmem [shape: f32[2,18,9,8], index: 0, kind: input, shape index: {}, may-alias: {0,1}]   ;;  %s5235_s1 = inlined_call_operand.vmem [shape: f32[2,18,9,8], index: 1, kind: input, shape index: {}, may-alias: {0,1}]   ;;  %s5236_s2 = inlined_call_operand.vmem [shape: f32[3,8,4], index: 2, kind: input, shape index: {}]   ;;  %s5237_s3 = inlined_call_operand.vmem [shape: f32[3,4,4], index: 3, kind: input, shape index: {}]   ;;  %s5238_s4 = inlined_call_operand.vmem [shape: f32[1,4], index: 4, kind: input, shape index: {}]   ;;  %s5239_s5 = inlined_call_operand.vmem [shape: f32[2,8,8,4], index: 5, kind: output, shape index: {}]  }
   0x1   :  { %s4802_s20 = smov 0  }
   0x2 LB: > { %s27_s21 = sadd.s32 1, %s4760_s19  ;;  %p4211_p0 = scmp.ge.s32.totalorder %s4764_s20, 1  ;;  %s4764_s20 = sphi %s4802_s20, %s15_s20   ;;  %s4760_s19 = sphi %s4800_s19, %s5241_s19   ;;  %s4756_s18 = sphi %s4798_s18, %s5240_s18  }
   0x3   : > { %p29_p1 = scmp.ge.s32.totalorder %s27_s21, 2  ;;  %p243_p2 = scmp.lt.s32.totalorder %s4764_s20, 3 }
   0x5   : > { %s5243_s21 = smov (%p29_p1, %s27_s21), 0  ;;  %p244_p3 = pnand %p4211_p0, %p243_p2 }
   0x6   : > { %p302_p4 = scmp.lt.s32.totalorder (!%p244_p3), %s4756_s18, 1 }
   0x7   : > { %247 = sbr.rel (%p244_p3) target bundleno = 309 (0x135), region = 40 }
   0xc   : > { %v344_v0 = vld [vmem:[%s5237_s3] sm:$0xf]  ;;  %vm349_vm0 = vcmask 1043456   ;;  %v4766_v2 = vmov 0.0   ;;  %vm4767_vm1 = vmmov 0   ;;  %s5245_s18 = smov (!%p302_p4, %s4756_s18), 1 }
   0xd   : > { %v4822_v1 = vld [vmem:[%s5236_s2] sm:$0xff]  ;;  %4473 = vmatprep.subr.mxu0 %v4766_v2  ;;  %4478 = vmatprep.subr.mxu1 %v4766_v2  ;;  %s4713_s26 = smul.u32 288, %s5245_s18  ;;  %vm345_vm2 = vcmask 31744   ;;  %vm423_vm3 = vcmask 64512   ;;  %v4847_v3 = vld [vmem:[%s5236_s2 + $0x8] sm:$0xff]  ;;  %v4867_v9 = vld [vmem:[%s5236_s2 + $0x10] sm:$0xff] }
   0xe   : > { %4474 = vmatpush3.msk.msra.mxu0 %vm349_vm0, %v344_v0  ;;  %4475 = vmatprep.mubr.msk.f32.mxu0 %vm4767_vm1, %v4766_v2  ;;  %v4223_v4 = vld [vmem:[%s5237_s3 + $0x4] sm:$0xf]  ;;  %v4230_v10 = vld [vmem:[%s5237_s3 + $0x8] sm:$0xf]  ;;  %v824_v13 = vld [vmem:[%s5237_s3] sm:$0xf] }
   0xf   : > { %4479 = vmatpush3.msra.mxu1 %v4822_v1  ;;  %4480 = vmatprep.mubr.msk.f32.mxu1 %vm4767_vm1, %v4766_v2  ;;  %s4842_s29 = scalar_lea.vmem %s5234_s0, %s4713_s26  ;;  %v4243_v14 = vld [vmem:[%s5237_s3 + $0x4] sm:$0xf]  ;;  %v4250_v17 = vld [vmem:[%s5237_s3 + $0x8] sm:$0xf]  ;;  %v1292_v20 = vld [vmem:[%s5237_s3] sm:$0xf] }
  0x10   : > { %4483 = vmatprep.subr.mxu0 %v4766_v2  ;;  %4488 = vmatprep.subr.mxu1 %v4766_v2  ;;  %v342_v5 = vld [vmem:[%s4842_s29 + $0x1] sm:$0xff]  ;;  %v4219_v7 = vld [vmem:[%s4842_s29 + $0x10] sm:$0xff]  ;;  %s4375_s15 = sadd.s32 256, %s4713_s26 }
  0x11   : > { %v341_v6 = vld [vmem:[%s4842_s29] sm:$0xff]  ;;  %4476 = vmatmul.mubr.msk.f32.vlgmr.msra.gmra.mxu0 %vm345_vm2, %v342_v5  ;;  %v4220_v8 = vld [vmem:[%s4842_s29 + $0x11] sm:$0xff]  ;;  %v4270_v24 = vld [vmem:[%s5237_s3 + $0x8] sm:$0xf]  ;;  %s327_s23 = scalar_lea.vmem %s5235_s1, %s4375_s15 }
  0x12   : > { %4481 = vmatmul.mubr.msk.f32.vlgmr.msra.gmra.mxu1 %vm423_vm3, %v341_v6  ;;  %4484 = vmatpush3.msra.mxu0 %v4847_v3  ;;  %v4226_v11 = vld [vmem:[%s4842_s29 + $0x20] sm:$0xff]  ;;  %v4239_v15 = vld [vmem:[%s4842_s29 + $0x30] sm:$0xff]  ;;  %v4290_v31 = vld [vmem:[%s5237_s3 + $0x8] sm:$0xf] }
  0x13   : > { %4489 = vmatpush3.msk.msra.mxu1 %vm349_vm0, %v4223_v4  ;;  %4485 = vmatprep.mubr.msk.f32.mxu0 %vm4767_vm1, %v4766_v2  ;;  %v4227_v12 = vld [vmem:[%s4842_s29 + $0x21] sm:$0xff]  ;;  %v4240_v16 = vld [vmem:[%s4842_s29 + $0x31] sm:$0xff] }
  0x14   : > { %4490 = vmatprep.mubr.msk.f32.mxu1 %vm4767_vm1, %v4766_v2  ;;  %4493 = vmatprep.subr.mxu0 %v4766_v2  ;;  %v4246_v18 = vld [vmem:[%s4842_s29 + $0x40] sm:$0xff]  ;;  %v4259_v22 = vld [vmem:[%s4842_s29 + $0x50] sm:$0xff]  ;;  %v4310_v38 = vld [vmem:[%s5237_s3 + $0x8] sm:$0xf] }
  0x15   : > { %4498 = vmatprep.subr.mxu1 %v4766_v2  ;;  %4486 = vmatmul.mubr.msk.f32.vlgmr.msra.gmra.mxu0 %vm423_vm3, %v4219_v7  ;;  %v4247_v19 = vld [vmem:[%s4842_s29 + $0x41] sm:$0xff]  ;;  %v4260_v23 = vld [vmem:[%s4842_s29 + $0x51] sm:$0xff] }
  0x16   : > { %4491 = vmatmul.mubr.msk.f32.vlgmr.msra.gmra.mxu1 %vm345_vm2, %v4220_v8  ;;  %4494 = vmatpush3.msra.mxu0 %v4867_v9  ;;  %v4263_v21 = vld [vmem:[%s5237_s3 + $0x4] sm:$0xf]  ;;  %v1760_v27 = vld [vmem:[%s5237_s3] sm:$0xf]  ;;  %v4279_v29 = vld [vmem:[%s4842_s29 + $0x70] sm:$0xff] }
  0x17   : > { %4499 = vmatpush3.msk.msra.mxu1 %vm349_vm0, %v4230_v10  ;;  %4495 = vmatprep.mubr.msk.f32.mxu0 %vm4767_vm1, %v4766_v2  ;;  %v4266_v25 = vld [vmem:[%s4842_s29 + $0x60] sm:$0xff]  ;;  %v4280_v30 = vld [vmem:[%s4842_s29 + $0x71] sm:$0xff]  ;;  %v4330_v45 = vld [vmem:[%s5237_s3 + $0x8] sm:$0xf] }
  0x18   : > { %4500 = vmatprep.mubr.msk.f32.mxu1 %vm4767_vm1, %v4766_v2  ;;  %4503 = vmatprep.subr.mxu0 %v4766_v2  ;;  %v4267_v26 = vld [vmem:[%s4842_s29 + $0x61] sm:$0xff]  ;;  %v4299_v36 = vld [vmem:[%s4842_s29 + $0x90] sm:$0xff] }
  0x19   : > { %4508 = vmatprep.subr.mxu1 %v4766_v2  ;;  %4496 = vmatmul.mubr.msk.f32.vlgmr.msra.gmra.mxu0 %vm423_vm3, %v4226_v11  ;;  %v4283_v28 = vld [vmem:[%s5237_s3 + $0x4] sm:$0xf]  ;;  %v2228_v34 = vld [vmem:[%s5237_s3] sm:$0xf]  ;;  %v4300_v37 = vld [vmem:[%s4842_s29 + $0x91] sm:$0xff] }
  0x1a   : > { %4501 = vmatmul.mubr.msk.f32.vlgmr.msra.gmra.mxu1 %vm345_vm2, %v4227_v12  ;;  %4504 = vmatpush3.msk.msra.mxu0 %vm349_vm0, %v824_v13  ;;  %v4286_v32 = vld [vmem:[%s4842_s29 + $0x80] sm:$0xff]  ;;  %v4319_v43 = vld [vmem:[%s4842_s29 + $0xb0] sm:$0xff]  ;;  %v4350_v52 = vld [vmem:[%s5237_s3 + $0x8] sm:$0xf] }
  0x1b   : > { %4509 = vmatpush3.msra.mxu1 %v4822_v1  ;;  %4505 = vmatprep.mubr.msk.f32.mxu0 %vm4767_vm1, %v4766_v2  ;;  %v4287_v33 = vld [vmem:[%s4842_s29 + $0x81] sm:$0xff]  ;;  %v4320_v44 = vld [vmem:[%s4842_s29 + $0xb1] sm:$0xff] }
  0x1c   : > { %4510 = vmatprep.mubr.msk.f32.mxu1 %vm4767_vm1, %v4766_v2  ;;  %4513 = vmatprep.subr.mxu0 %v4766_v2  ;;  %v4303_v35 = vld [vmem:[%s5237_s3 + $0x4] sm:$0xf]  ;;  %v2696_v41 = vld [vmem:[%s5237_s3] sm:$0xf]  ;;  %v4339_v50 = vld [vmem:[%s4842_s29 + $0xd0] sm:$0xff] }
  0x1d   : > { %4518 = vmatprep.subr.mxu1 %v4766_v2  ;;  %4506 = vmatmul.mubr.msk.f32.vlgmr.msra.gmra.mxu0 %vm345_vm2, %v4227_v12  ;;  %v4306_v39 = vld [vmem:[%s4842_s29 + $0xa0] sm:$0xff]  ;;  %v4340_v51 = vld [vmem:[%s4842_s29 + $0xd1] sm:$0xff]  ;;  %v4368_v59 = vld [vmem:[%s5237_s3 + $0x8] sm:$0xf] }
  0x1e   : > { %4511 = vmatmul.mubr.msk.f32.vlgmr.msra.gmra.mxu1 %vm423_vm3, %v4226_v11  ;;  %4514 = vmatpush3.msra.mxu0 %v4847_v3  ;;  %v4307_v40 = vld [vmem:[%s4842_s29 + $0xa1] sm:$0xff]  ;;  %v4359_v57 = vld [vmem:[%s4842_s29 + $0xf0] sm:$0xff] }
  0x1f   : > { %4519 = vmatpush3.msk.msra.mxu1 %vm349_vm0, %v4243_v14  ;;  %4515 = vmatprep.mubr.msk.f32.mxu0 %vm4767_vm1, %v4766_v2  ;;  %v4323_v42 = vld [vmem:[%s5237_s3 + $0x4] sm:$0xf]  ;;  %v3164_v48 = vld [vmem:[%s5237_s3] sm:$0xf]  ;;  %v4360_v58 = vld [vmem:[%s4842_s29 + $0xf1] sm:$0xff] }
  0x20   : > { %4520 = vmatprep.mubr.msk.f32.mxu1 %vm4767_vm1, %v4766_v2  ;;  %4523 = vmatprep.subr.mxu0 %v4766_v2  ;;  %v4326_v46 = vld [vmem:[%s4842_s29 + $0xc0] sm:$0xff] }
  0x21   : > { %4528 = vmatprep.subr.mxu1 %v4766_v2  ;;  %4516 = vmatmul.mubr.msk.f32.vlgmr.msra.gmra.mxu0 %vm423_vm3, %v4239_v15  ;;  %v4327_v47 = vld [vmem:[%s4842_s29 + $0xc1] sm:$0xff] }
  0x22   : > { %4521 = vmatmul.mubr.msk.f32.vlgmr.msra.gmra.mxu1 %vm345_vm2, %v4240_v16  ;;  %4524 = vmatpush3.msra.mxu0 %v4867_v9  ;;  %v4343_v49 = vld [vmem:[%s5237_s3 + $0x4] sm:$0xf]  ;;  %v3632_v55 = vld [vmem:[%s5237_s3] sm:$0xf] }
  0x23   : > { %4529 = vmatpush3.msk.msra.mxu1 %vm349_vm0, %v4250_v17  ;;  %4525 = vmatprep.mubr.msk.f32.mxu0 %vm4767_vm1, %v4766_v2  ;;  %v4346_v53 = vld [vmem:[%s4842_s29 + $0xe0] sm:$0xff] }
  0x24   : > { %4530 = vmatprep.mubr.msk.f32.mxu1 %vm4767_vm1, %v4766_v2  ;;  %4533 = vmatprep.subr.mxu0 %v4766_v2  ;;  %v4347_v54 = vld [vmem:[%s4842_s29 + $0xe1] sm:$0xff]  ;;  %s4376_s29 = sshll.u32 %s5245_s18, 6 }
  0x25   : > { %4538 = vmatprep.subr.mxu1 %v4766_v2  ;;  %4526 = vmatmul.mubr.msk.f32.vlgmr.msra.gmra.mxu0 %vm423_vm3, %v4246_v18  ;;  %v4363_v56 = vld [vmem:[%s5237_s3 + $0x4] sm:$0xf]  ;;  %s5199_s30 = scalar_lea.vmem %s5239_s5, %s4376_s29 }
  0x26   : > { %4531 = vmatmul.mubr.msk.f32.vlgmr.msra.gmra.mxu1 %vm345_vm2, %v4247_v19  ;;  %4534 = vmatpush3.msk.msra.mxu0 %vm349_vm0, %v1292_v20  ;;  %v3938_v60 = vld [vmem:[%s327_s23] sm:$0xff] }
  0x27   : > { %4539 = vmatpush3.msra.mxu1 %v4822_v1  ;;  %4535 = vmatprep.mubr.msk.f32.mxu0 %vm4767_vm1, %v4766_v2  ;;  %v3939_v61 = vld [vmem:[%s327_s23 + $0x1] sm:$0xff] }
  0x28   : > { %4540 = vmatprep.mubr.msk.f32.mxu1 %vm4767_vm1, %v4766_v2  ;;  %4543 = vmatprep.subr.mxu0 %v4766_v2 }
  0x29   : > { %4548 = vmatprep.subr.mxu1 %v4766_v2  ;;  %4536 = vmatmul.mubr.msk.f32.vlgmr.msra.gmra.mxu0 %vm345_vm2, %v4247_v19 }
  0x2a   : > { %4541 = vmatmul.mubr.msk.f32.vlgmr.msra.gmra.mxu1 %vm423_vm3, %v4246_v18  ;;  %4544 = vmatpush3.msra.mxu0 %v4847_v3 }
  0x2b   : > { %4549 = vmatpush3.msk.msra.mxu1 %vm349_vm0, %v4263_v21  ;;  %4545 = vmatprep.mubr.msk.f32.mxu0 %vm4767_vm1, %v4766_v2 }
  0x2c   : > { %4550 = vmatprep.mubr.msk.f32.mxu1 %vm4767_vm1, %v4766_v2  ;;  %4553 = vmatprep.subr.mxu0 %v4766_v2 }
  0x2d   : > { %4558 = vmatprep.subr.mxu1 %v4766_v2  ;;  %4546 = vmatmul.mubr.msk.f32.vlgmr.msra.gmra.mxu0 %vm423_vm3, %v4259_v22 }
  0x2e   : > { %4551 = vmatmul.mubr.msk.f32.vlgmr.msra.gmra.mxu1 %vm345_vm2, %v4260_v23  ;;  %4554 = vmatpush3.msra.mxu0 %v4867_v9 }
  0x2f   : > { %4559 = vmatpush3.msk.msra.mxu1 %vm349_vm0, %v4270_v24  ;;  %4555 = vmatprep.mubr.msk.f32.mxu0 %vm4767_vm1, %v4766_v2 }
  0x30   : > { %4560 = vmatprep.mubr.msk.f32.mxu1 %vm4767_vm1, %v4766_v2  ;;  %4563 = vmatprep.subr.mxu0 %v4766_v2 }
  0x31   : > { %4568 = vmatprep.subr.mxu1 %v4766_v2  ;;  %4556 = vmatmul.mubr.msk.f32.vlgmr.msra.gmra.mxu0 %vm423_vm3, %v4266_v25 }
  0x32   : > { %4561 = vmatmul.mubr.msk.f32.vlgmr.msra.gmra.mxu1 %vm345_vm2, %v4267_v26  ;;  %4564 = vmatpush3.msk.msra.mxu0 %vm349_vm0, %v1760_v27 }
  0x33   : > { %4569 = vmatpush3.msra.mxu1 %v4822_v1  ;;  %4565 = vmatprep.mubr.msk.f32.mxu0 %vm4767_vm1, %v4766_v2 }
  0x34   : > { %4570 = vmatprep.mubr.msk.f32.mxu1 %vm4767_vm1, %v4766_v2  ;;  %4573 = vmatprep.subr.mxu0 %v4766_v2 }
  0x35   : > { %4578 = vmatprep.subr.mxu1 %v4766_v2  ;;  %4566 = vmatmul.mubr.msk.f32.vlgmr.msra.gmra.mxu0 %vm345_vm2, %v4267_v26 }
  0x36   : > { %4571 = vmatmul.mubr.msk.f32.vlgmr.msra.gmra.mxu1 %vm423_vm3, %v4266_v25  ;;  %4574 = vmatpush3.msra.mxu0 %v4847_v3 }
  0x37   : > { %4579 = vmatpush3.msk.msra.mxu1 %vm349_vm0, %v4283_v28  ;;  %4575 = vmatprep.mubr.msk.f32.mxu0 %vm4767_vm1, %v4766_v2 }
  0x38   : > { %4580 = vmatprep.mubr.msk.f32.mxu1 %vm4767_vm1, %v4766_v2  ;;  %4583 = vmatprep.subr.mxu0 %v4766_v2 }
  0x39   : > { %4588 = vmatprep.subr.mxu1 %v4766_v2  ;;  %4576 = vmatmul.mubr.msk.f32.vlgmr.msra.gmra.mxu0 %vm423_vm3, %v4279_v29 }
  0x3a   : > { %4581 = vmatmul.mubr.msk.f32.vlgmr.msra.gmra.mxu1 %vm345_vm2, %v4280_v30  ;;  %4584 = vmatpush3.msra.mxu0 %v4867_v9 }
  0x3b   : > { %4589 = vmatpush3.msk.msra.mxu1 %vm349_vm0, %v4290_v31  ;;  %4585 = vmatprep.mubr.msk.f32.mxu0 %vm4767_vm1, %v4766_v2 }
  0x3c   : > { %4590 = vmatprep.mubr.msk.f32.mxu1 %vm4767_vm1, %v4766_v2  ;;  %4593 = vmatprep.subr.mxu0 %v4766_v2 }
  0x3d   : > { %4598 = vmatprep.subr.mxu1 %v4766_v2  ;;  %4586 = vmatmul.mubr.msk.f32.vlgmr.msra.gmra.mxu0 %vm423_vm3, %v4286_v32 }
  0x3e   : > { %4591 = vmatmul.mubr.msk.f32.vlgmr.msra.gmra.mxu1 %vm345_vm2, %v4287_v33  ;;  %4594 = vmatpush3.msk.msra.mxu0 %vm349_vm0, %v2228_v34 }
  0x3f   : > { %4599 = vmatpush3.msra.mxu1 %v4822_v1  ;;  %4595 = vmatprep.mubr.msk.f32.mxu0 %vm4767_vm1, %v4766_v2 }
  0x40   : > { %4600 = vmatprep.mubr.msk.f32.mxu1 %vm4767_vm1, %v4766_v2  ;;  %4603 = vmatprep.subr.mxu0 %v4766_v2 }
  0x41   : > { %4608 = vmatprep.subr.mxu1 %v4766_v2  ;;  %4596 = vmatmul.mubr.msk.f32.vlgmr.msra.gmra.mxu0 %vm345_vm2, %v4287_v33 }
  0x42   : > { %4601 = vmatmul.mubr.msk.f32.vlgmr.msra.gmra.mxu1 %vm423_vm3, %v4286_v32  ;;  %4604 = vmatpush3.msra.mxu0 %v4847_v3 }
  0x43   : > { %4609 = vmatpush3.msk.msra.mxu1 %vm349_vm0, %v4303_v35  ;;  %4605 = vmatprep.mubr.msk.f32.mxu0 %vm4767_vm1, %v4766_v2 }
  0x44   : > { %4610 = vmatprep.mubr.msk.f32.mxu1 %vm4767_vm1, %v4766_v2  ;;  %4613 = vmatprep.subr.mxu0 %v4766_v2 }
  0x45   : > { %4618 = vmatprep.subr.mxu1 %v4766_v2  ;;  %4606 = vmatmul.mubr.msk.f32.vlgmr.msra.gmra.mxu0 %vm423_vm3, %v4299_v36 }
  0x46   : > { %4611 = vmatmul.mubr.msk.f32.vlgmr.msra.gmra.mxu1 %vm345_vm2, %v4300_v37  ;;  %4614 = vmatpush3.msra.mxu0 %v4867_v9 }
  0x47   : > { %4619 = vmatpush3.msk.msra.mxu1 %vm349_vm0, %v4310_v38  ;;  %4615 = vmatprep.mubr.msk.f32.mxu0 %vm4767_vm1, %v4766_v2 }
  0x48   : > { %4620 = vmatprep.mubr.msk.f32.mxu1 %vm4767_vm1, %v4766_v2  ;;  %4623 = vmatprep.subr.mxu0 %v4766_v2 }
  0x49   : > { %4628 = vmatprep.subr.mxu1 %v4766_v2  ;;  %4616 = vmatmul.mubr.msk.f32.vlgmr.msra.gmra.mxu0 %vm423_vm3, %v4306_v39 }
  0x4a   : > { %4621 = vmatmul.mubr.msk.f32.vlgmr.msra.gmra.mxu1 %vm345_vm2, %v4307_v40  ;;  %4624 = vmatpush3.msk.msra.mxu0 %vm349_vm0, %v2696_v41 }
  0x4b   : > { %4629 = vmatpush3.msra.mxu1 %v4822_v1  ;;  %4625 = vmatprep.mubr.msk.f32.mxu0 %vm4767_vm1, %v4766_v2 }
  0x4c   : > { %4630 = vmatprep.mubr.msk.f32.mxu1 %vm4767_vm1, %v4766_v2  ;;  %4633 = vmatprep.subr.mxu0 %v4766_v2 }
  0x4d   : > { %4638 = vmatprep.subr.mxu1 %v4766_v2  ;;  %4626 = vmatmul.mubr.msk.f32.vlgmr.msra.gmra.mxu0 %vm345_vm2, %v4307_v40 }
  0x4e   : > { %4631 = vmatmul.mubr.msk.f32.vlgmr.msra.gmra.mxu1 %vm423_vm3, %v4306_v39  ;;  %4634 = vmatpush3.msra.mxu0 %v4847_v3 }
  0x4f   : > { %4639 = vmatpush3.msk.msra.mxu1 %vm349_vm0, %v4323_v42  ;;  %4635 = vmatprep.mubr.msk.f32.mxu0 %vm4767_vm1, %v4766_v2 }
  0x50   : > { %4640 = vmatprep.mubr.msk.f32.mxu1 %vm4767_vm1, %v4766_v2  ;;  %4643 = vmatprep.subr.mxu0 %v4766_v2 }
  0x51   : > { %4648 = vmatprep.subr.mxu1 %v4766_v2  ;;  %4636 = vmatmul.mubr.msk.f32.vlgmr.msra.gmra.mxu0 %vm423_vm3, %v4319_v43 }
  0x52   : > { %4641 = vmatmul.mubr.msk.f32.vlgmr.msra.gmra.mxu1 %vm345_vm2, %v4320_v44  ;;  %4644 = vmatpush3.msra.mxu0 %v4867_v9 }
  0x53   : > { %4649 = vmatpush3.msk.msra.mxu1 %vm349_vm0, %v4330_v45  ;;  %4645 = vmatprep.mubr.msk.f32.mxu0 %vm4767_vm1, %v4766_v2 }
  0x54   : > { %4650 = vmatprep.mubr.msk.f32.mxu1 %vm4767_vm1, %v4766_v2  ;;  %4653 = vmatprep.subr.mxu0 %v4766_v2 }
  0x55   : > { %4658 = vmatprep.subr.mxu1 %v4766_v2  ;;  %4646 = vmatmul.mubr.msk.f32.vlgmr.msra.gmra.mxu0 %vm423_vm3, %v4326_v46 }
  0x56   : > { %4651 = vmatmul.mubr.msk.f32.vlgmr.msra.gmra.mxu1 %vm345_vm2, %v4327_v47  ;;  %4654 = vmatpush3.msk.msra.mxu0 %vm349_vm0, %v3164_v48 }
  0x57   : > { %4659 = vmatpush3.msra.mxu1 %v4822_v1  ;;  %4655 = vmatprep.mubr.msk.f32.mxu0 %vm4767_vm1, %v4766_v2 }
  0x58   : > { %4660 = vmatprep.mubr.msk.f32.mxu1 %vm4767_vm1, %v4766_v2  ;;  %4663 = vmatprep.subr.mxu0 %v4766_v2 }
  0x59   : > { %4668 = vmatprep.subr.mxu1 %v4766_v2  ;;  %4656 = vmatmul.mubr.msk.f32.vlgmr.msra.gmra.mxu0 %vm345_vm2, %v4327_v47 }
  0x5a   : > { %4661 = vmatmul.mubr.msk.f32.vlgmr.msra.gmra.mxu1 %vm423_vm3, %v4326_v46  ;;  %4664 = vmatpush3.msra.mxu0 %v4847_v3 }
  0x5b   : > { %4669 = vmatpush3.msk.msra.mxu1 %vm349_vm0, %v4343_v49  ;;  %4665 = vmatprep.mubr.msk.f32.mxu0 %vm4767_vm1, %v4766_v2 }
  0x5c   : > { %4670 = vmatprep.mubr.msk.f32.mxu1 %vm4767_vm1, %v4766_v2  ;;  %4673 = vmatprep.subr.mxu0 %v4766_v2 }
  0x5d   : > { %4678 = vmatprep.subr.mxu1 %v4766_v2  ;;  %4666 = vmatmul.mubr.msk.f32.vlgmr.msra.gmra.mxu0 %vm423_vm3, %v4339_v50 }
  0x5e   : > { %4671 = vmatmul.mubr.msk.f32.vlgmr.msra.gmra.mxu1 %vm345_vm2, %v4340_v51  ;;  %4674 = vmatpush3.msra.mxu0 %v4867_v9 }
  0x5f   : > { %4679 = vmatpush3.msk.msra.mxu1 %vm349_vm0, %v4350_v52  ;;  %4675 = vmatprep.mubr.msk.f32.mxu0 %vm4767_vm1, %v4766_v2 }
  0x60   : > { %4680 = vmatprep.mubr.msk.f32.mxu1 %vm4767_vm1, %v4766_v2  ;;  %4683 = vmatprep.subr.mxu0 %v4766_v2 }
  0x61   : > { %4688 = vmatprep.subr.mxu1 %v4766_v2  ;;  %4676 = vmatmul.mubr.msk.f32.vlgmr.msra.gmra.mxu0 %vm423_vm3, %v4346_v53 }
  0x62   : > { %4681 = vmatmul.mubr.msk.f32.vlgmr.msra.gmra.mxu1 %vm345_vm2, %v4347_v54  ;;  %4684 = vmatpush3.msk.msra.mxu0 %vm349_vm0, %v3632_v55 }
  0x63   : > { %4689 = vmatpush3.msra.mxu1 %v4822_v1  ;;  %4685 = vmatprep.mubr.msk.f32.mxu0 %vm4767_vm1, %v4766_v2 }
  0x64   : > { %4690 = vmatprep.mubr.msk.f32.mxu1 %vm4767_vm1, %v4766_v2  ;;  %4693 = vmatprep.subr.mxu0 %v4766_v2 }
  0x65   : > { %4698 = vmatprep.subr.mxu1 %v4766_v2  ;;  %4686 = vmatmul.mubr.msk.f32.vlgmr.msra.gmra.mxu0 %vm345_vm2, %v4347_v54 }
  0x66   : > { %4691 = vmatmul.mubr.msk.f32.vlgmr.msra.gmra.mxu1 %vm423_vm3, %v4346_v53  ;;  %4694 = vmatpush3.msra.mxu0 %v4847_v3 }
  0x67   : > { %4699 = vmatpush3.msk.msra.mxu1 %vm349_vm0, %v4363_v56  ;;  %4695 = vmatprep.mubr.msk.f32.mxu0 %vm4767_vm1, %v4766_v2 }
  0x68   : > { %4700 = vmatprep.mubr.msk.f32.mxu1 %vm4767_vm1, %v4766_v2  ;;  %4703 = vmatprep.subr.mxu0 %v4766_v2 }
  0x69   : > { %4708 = vmatprep.subr.mxu1 %v4766_v2  ;;  %4696 = vmatmul.mubr.msk.f32.vlgmr.msra.gmra.mxu0 %vm423_vm3, %v4359_v57 }
  0x6a   : > { %4701 = vmatmul.mubr.msk.f32.vlgmr.msra.gmra.mxu1 %vm345_vm2, %v4360_v58  ;;  %4704 = vmatpush3.msra.mxu0 %v4867_v9 }
  0x6b   : > { %4709 = vmatpush3.msk.msra.mxu1 %vm349_vm0, %v4368_v59  ;;  %4705 = vmatprep.mubr.msk.f32.mxu0 %vm4767_vm1, %v4766_v2 }
  0x6c   : > { %4710 = vmatprep.mubr.msk.f32.mxu1 %vm4767_vm1, %v4766_v2  ;;  %v5194_v2 = vld [vmem:[%s5238_s4] ss:$0 sm:$0xff] }
  0x6d   : > { %4706 = vmatmul.mubr.msk.f32.vlgmr.msra.gmra.mxu0 %vm423_vm3, %v3938_v60 }
  0x6e   : > { %4711 = vmatmul.mubr.msk.f32.vlgmr.msra.gmra.mxu1 %vm345_vm2, %v3939_v61 }
  0xd1   : > { %v419_v62 = vpop.f32.mrf.mxu0 }
  0xd2   : > { %v493_v63 = vpop.f32.mrf.mxu1 }
  0xd3   : > { %v4477_v0 = vpop.f32.mrf.mxu0  ;;  %v494_v3 = vadd.f32 %v493_v63, %v419_v62 }
  0xd4   : > { %v4482_v1 = vpop.f32.mrf.mxu1 }
  0xd5   : > { %v571_v4 = vpop.f32.mrf.mxu0 }
  0xd6   : > { %v650_v5 = vpop.f32.mrf.mxu1  ;;  %v575_v6 = vadd.f32 %v571_v4, %v494_v3 }
  0xd7   : > { %v4487_v7 = vpop.f32.mrf.mxu0 }
  0xd8   : > { %v4492_v8 = vpop.f32.mrf.mxu1  ;;  %v654_v9 = vadd.f32 %v650_v5, %v575_v6 }
  0xd9   : > { %v729_v10 = vpop.f32.mrf.mxu0 }
  0xda   : > { %v808_v11 = vpop.f32.mrf.mxu1  ;;  %v733_v12 = vadd.f32 %v729_v10, %v654_v9 }
  0xdb   : > { %v4497_v13 = vpop.f32.mrf.mxu0 }
  0xdc   : > { %v4502_v14 = vpop.f32.mrf.mxu1  ;;  %v812_v15 = vadd.f32 %v808_v11, %v733_v12 }
  0xdd   : > { %v897_v16 = vpop.f32.mrf.mxu0 }
  0xde   : > { %v970_v17 = vpop.f32.mrf.mxu1  ;;  %v819_v18 = vadd.f32 %v5194_v2, %v812_v15 }
  0xdf   : > { %v4507_v19 = vpop.f32.mrf.mxu0  ;;  %v971_v21 = vadd.f32 %v970_v17, %v897_v16 }
  0xe0   : > { %v4512_v20 = vpop.f32.mrf.mxu1  ;;  %820 = vst.msk [vmem:[%s5199_s30] sm:$0xff] %vm345_vm2, %v819_v18 }
  0xe1   : > { %v1047_v22 = vpop.f32.mrf.mxu0 }
  0xe2   : > { %v1125_v23 = vpop.f32.mrf.mxu1  ;;  %v1051_v24 = vadd.f32 %v1047_v22, %v971_v21 }
  0xe3   : > { %v4517_v25 = vpop.f32.mrf.mxu0 }
  0xe4   : > { %v4522_v26 = vpop.f32.mrf.mxu1  ;;  %v1129_v27 = vadd.f32 %v1125_v23, %v1051_v24 }
  0xe5   : > { %v1203_v28 = vpop.f32.mrf.mxu0 }
  0xe6   : > { %v1281_v29 = vpop.f32.mrf.mxu1  ;;  %v1207_v30 = vadd.f32 %v1203_v28, %v1129_v27 }
  0xe7   : > { %v4527_v31 = vpop.f32.mrf.mxu0 }
  0xe8   : > { %v4532_v32 = vpop.f32.mrf.mxu1  ;;  %v1285_v33 = vadd.f32 %v1281_v29, %v1207_v30 }
  0xe9   : > { %v1365_v34 = vpop.f32.mrf.mxu0 }
  0xea   : > { %v1438_v35 = vpop.f32.mrf.mxu1  ;;  %v1286_v36 = vadd.f32 %v5194_v2, %v1285_v33 }
  0xeb   : > { %v4537_v37 = vpop.f32.mrf.mxu0  ;;  %v1439_v39 = vadd.f32 %v1438_v35, %v1365_v34 }
  0xec   : > { %v4542_v38 = vpop.f32.mrf.mxu1  ;;  %4253 = vst.msk [vmem:[%s5199_s30 + $0x8] sm:$0xff] %vm345_vm2, %v1286_v36 }
  0xed   : > { %v1515_v40 = vpop.f32.mrf.mxu0 }
  0xee   : > { %v1593_v41 = vpop.f32.mrf.mxu1  ;;  %v1519_v42 = vadd.f32 %v1515_v40, %v1439_v39 }
  0xef   : > { %v4547_v43 = vpop.f32.mrf.mxu0 }
  0xf0   : > { %v4552_v44 = vpop.f32.mrf.mxu1  ;;  %v1597_v45 = vadd.f32 %v1593_v41, %v1519_v42 }
  0xf1   : > { %v1671_v46 = vpop.f32.mrf.mxu0 }
  0xf2   : > { %v1749_v47 = vpop.f32.mrf.mxu1  ;;  %v1675_v48 = vadd.f32 %v1671_v46, %v1597_v45 }
  0xf3   : > { %v4557_v49 = vpop.f32.mrf.mxu0 }
  0xf4   : > { %v4562_v50 = vpop.f32.mrf.mxu1  ;;  %v1753_v51 = vadd.f32 %v1749_v47, %v1675_v48 }
  0xf5   : > { %v1833_v52 = vpop.f32.mrf.mxu0 }
  0xf6   : > { %v1906_v53 = vpop.f32.mrf.mxu1  ;;  %v1754_v54 = vadd.f32 %v5194_v2, %v1753_v51 }
  0xf7   : > { %v4567_v55 = vpop.f32.mrf.mxu0  ;;  %v1907_v57 = vadd.f32 %v1906_v53, %v1833_v52 }
  0xf8   : > { %v4572_v56 = vpop.f32.mrf.mxu1  ;;  %4273 = vst.msk [vmem:[%s5199_s30 + $0x10] sm:$0xff] %vm345_vm2, %v1754_v54 }
  0xf9   : > { %v1983_v58 = vpop.f32.mrf.mxu0 }
  0xfa   : > { %v2061_v59 = vpop.f32.mrf.mxu1  ;;  %v1987_v60 = vadd.f32 %v1983_v58, %v1907_v57 }
  0xfb   : > { %v4577_v61 = vpop.f32.mrf.mxu0 }
  0xfc   : > { %v4582_v62 = vpop.f32.mrf.mxu1  ;;  %v2065_v63 = vadd.f32 %v2061_v59, %v1987_v60 }
  0xfd   : > { %v2139_v0 = vpop.f32.mrf.mxu0 }
  0xfe   : > { %v2217_v1 = vpop.f32.mrf.mxu1  ;;  %v2143_v3 = vadd.f32 %v2139_v0, %v2065_v63 }
  0xff   : > { %v4587_v4 = vpop.f32.mrf.mxu0 }
 0x100   : > { %v4592_v5 = vpop.f32.mrf.mxu1  ;;  %v2221_v6 = vadd.f32 %v2217_v1, %v2143_v3 }
 0x101   : > { %v2301_v7 = vpop.f32.mrf.mxu0 }
 0x102   : > { %v2374_v8 = vpop.f32.mrf.mxu1  ;;  %v2222_v9 = vadd.f32 %v5194_v2, %v2221_v6 }
 0x103   : > { %v4597_v10 = vpop.f32.mrf.mxu0  ;;  %v2375_v12 = vadd.f32 %v2374_v8, %v2301_v7 }
 0x104   : > { %v4602_v11 = vpop.f32.mrf.mxu1  ;;  %4293 = vst.msk [vmem:[%s5199_s30 + $0x18] sm:$0xff] %vm345_vm2, %v2222_v9 }
 0x105   : > { %v2451_v13 = vpop.f32.mrf.mxu0 }
 0x106   : > { %v2529_v14 = vpop.f32.mrf.mxu1  ;;  %v2455_v15 = vadd.f32 %v2451_v13, %v2375_v12 }
 0x107   : > { %v4607_v16 = vpop.f32.mrf.mxu0 }
 0x108   : > { %v4612_v17 = vpop.f32.mrf.mxu1  ;;  %v2533_v18 = vadd.f32 %v2529_v14, %v2455_v15 }
 0x109   : > { %v2607_v19 = vpop.f32.mrf.mxu0 }
 0x10a   : > { %v2685_v20 = vpop.f32.mrf.mxu1  ;;  %v2611_v21 = vadd.f32 %v2607_v19, %v2533_v18 }
 0x10b   : > { %v4617_v22 = vpop.f32.mrf.mxu0 }
 0x10c   : > { %v4622_v23 = vpop.f32.mrf.mxu1  ;;  %v2689_v24 = vadd.f32 %v2685_v20, %v2611_v21 }
 0x10d   : > { %v2769_v25 = vpop.f32.mrf.mxu0 }
 0x10e   : > { %v2842_v26 = vpop.f32.mrf.mxu1  ;;  %v2690_v27 = vadd.f32 %v5194_v2, %v2689_v24 }
 0x10f   : > { %v4627_v28 = vpop.f32.mrf.mxu0  ;;  %v2843_v30 = vadd.f32 %v2842_v26, %v2769_v25 }
 0x110   : > { %v4632_v29 = vpop.f32.mrf.mxu1  ;;  %4313 = vst.msk [vmem:[%s5199_s30 + $0x20] sm:$0xff] %vm345_vm2, %v2690_v27 }
 0x111   : > { %v2919_v31 = vpop.f32.mrf.mxu0 }
 0x112   : > { %v2997_v32 = vpop.f32.mrf.mxu1  ;;  %v2923_v33 = vadd.f32 %v2919_v31, %v2843_v30 }
 0x113   : > { %v4637_v34 = vpop.f32.mrf.mxu0 }
 0x114   : > { %v4642_v35 = vpop.f32.mrf.mxu1  ;;  %v3001_v36 = vadd.f32 %v2997_v32, %v2923_v33 }
 0x115   : > { %v3075_v37 = vpop.f32.mrf.mxu0 }
 0x116   : > { %v3153_v38 = vpop.f32.mrf.mxu1  ;;  %v3079_v39 = vadd.f32 %v3075_v37, %v3001_v36 }
 0x117   : > { %v4647_v40 = vpop.f32.mrf.mxu0 }
 0x118   : > { %v4652_v41 = vpop.f32.mrf.mxu1  ;;  %v3157_v42 = vadd.f32 %v3153_v38, %v3079_v39 }
 0x119   : > { %v3237_v43 = vpop.f32.mrf.mxu0 }
 0x11a   : > { %v3310_v44 = vpop.f32.mrf.mxu1  ;;  %v3158_v45 = vadd.f32 %v5194_v2, %v3157_v42 }
 0x11b   : > { %v4657_v46 = vpop.f32.mrf.mxu0  ;;  %v3311_v48 = vadd.f32 %v3310_v44, %v3237_v43 }
 0x11c   : > { %v4662_v47 = vpop.f32.mrf.mxu1  ;;  %4333 = vst.msk [vmem:[%s5199_s30 + $0x28] sm:$0xff] %vm345_vm2, %v3158_v45 }
 0x11d   : > { %v3387_v49 = vpop.f32.mrf.mxu0 }
 0x11e   : > { %v3465_v50 = vpop.f32.mrf.mxu1  ;;  %v3391_v51 = vadd.f32 %v3387_v49, %v3311_v48 }
 0x11f   : > { %v4667_v52 = vpop.f32.mrf.mxu0 }
 0x120   : > { %v4672_v53 = vpop.f32.mrf.mxu1  ;;  %v3469_v54 = vadd.f32 %v3465_v50, %v3391_v51 }
 0x121   : > { %v3543_v55 = vpop.f32.mrf.mxu0 }
 0x122   : > { %v3621_v56 = vpop.f32.mrf.mxu1  ;;  %v3547_v57 = vadd.f32 %v3543_v55, %v3469_v54 }
 0x123   : > { %v4677_v58 = vpop.f32.mrf.mxu0 }
 0x124   : > { %v4682_v59 = vpop.f32.mrf.mxu1  ;;  %v3625_v60 = vadd.f32 %v3621_v56, %v3547_v57 }
 0x125   : > { %v3705_v61 = vpop.f32.mrf.mxu0 }
 0x126   : > { %v3778_v62 = vpop.f32.mrf.mxu1  ;;  %v3626_v63 = vadd.f32 %v5194_v2, %v3625_v60 }
 0x127   : > { %v4687_v0 = vpop.f32.mrf.mxu0  ;;  %v3779_v3 = vadd.f32 %v3778_v62, %v3705_v61 }
 0x128   : > { %v4692_v1 = vpop.f32.mrf.mxu1  ;;  %4353 = vst.msk [vmem:[%s5199_s30 + $0x30] sm:$0xff] %vm345_vm2, %v3626_v63 }
 0x129   : > { %v3855_v4 = vpop.f32.mrf.mxu0 }
 0x12a   : > { %v3933_v5 = vpop.f32.mrf.mxu1  ;;  %v3859_v6 = vadd.f32 %v3855_v4, %v3779_v3 }
 0x12b   : > { %v4697_v7 = vpop.f32.mrf.mxu0 }
 0x12c   : > { %v4702_v8 = vpop.f32.mrf.mxu1  ;;  %v3937_v9 = vadd.f32 %v3933_v5, %v3859_v6 }
 0x12d   : > { %v4010_v10 = vpop.f32.mrf.mxu0 }
 0x12e   : > { %v4088_v11 = vpop.f32.mrf.mxu1  ;;  %v4014_v12 = vadd.f32 %v4010_v10, %v3937_v9 }
 0x12f   : > { %v4707_v13 = vpop.f32.mrf.mxu0 }
 0x130   : > { %v4712_v14 = vpop.f32.mrf.mxu1  ;;  %v4092_v15 = vadd.f32 %v4088_v11, %v4014_v12 }
 0x132   : > { %v4093_v16 = vadd.f32 %v5194_v2, %v4092_v15 }
 0x134   : > { %4371 = vst.msk [vmem:[%s5199_s30 + $0x38] sm:$0xff] %vm345_vm2, %v4093_v16 }
 0x135 PF: > { %s15_s20 = sadd.s32 1, %s4764_s20   ;;  %s5240_s18 = smov %s4760_s19 }
 0x136   : > { %p12_p5 = scmp.ge.s32.totalorder %s15_s20, 4   ;;  %s5241_s19 = smov %s5243_s21 }
 0x138   :  { %14 = sbr.rel (!%p12_p5) target bundleno = 2 (0x2), region = 99 }

</bundles_post_ra>
